<compile_context>
chip_gen: v7x
topology: tpu7x:2x2x1
jax: 0.10.0
libtpu: 0.0.40
codegen_flags: <defaults>
</compile_context>

<pallas_src>
import functools

import jax
import jax.numpy as jnp
from jax.experimental import pallas as pl
from jax.experimental.pallas import tpu as pltpu

d_k = d_v = 64
n_heads = 8
d_model = 768
LN_EPS = 1e-5
MASK_FILL = -1e9
HEADS_PER_BLK = 2                  # 2 heads * 64 = 128 lanes per SDPA block
HD = n_heads * d_k                 # 512
SCALE = 1.0 / (d_k ** 0.5)


def _device_kind():
    try:
        return jax.devices()[0].device_kind.lower()
    except Exception:
        return ""


def _use_bf16_exp():
    # bf16 EUP exists on v6e / v7x; keep exp in f32 on v5e and older.
    kind = _device_kind()
    return not any(s in kind for s in ("v2", "v3", "v4", "v5"))


def _row_tile(M, cap=512):
    """Largest power-of-two row tile <= cap dividing M; fall back to full M."""
    t = cap
    while t >= 8:
        if M % t == 0:
            return t
        t //= 2
    return M


def _q_tile(S):
    """Query tile for the SDPA kernel."""
    if S <= 256:
        return S
    for t in (256, 128, 64, 32, 16, 8):
        if S % t == 0:
            return t
    return S
    # TODO(synk): on v7x (64 MiB VMEM) halve this cap for very long S.


# ---------------------------------------------------------------------------
# Kernel 1: fused Q/K/V projections, tiled over rows, one lane-dense output.
#   self-attention path: one x input, one (768, 1536) matmul.
#   cross path: three x inputs, three matmuls against slices of the fused W.
#   W_Q / b_Q are pre-scaled by 1/sqrt(d_k) on the host.
# ---------------------------------------------------------------------------
def _qkv_proj_self_kernel(x_ref, w_ref, b_ref, o_ref):
    x = x_ref[...].astype(jnp.bfloat16)
    o_ref[...] = (jnp.dot(x, w_ref[...], preferred_element_type=jnp.float32)
                  + b_ref[...]).astype(o_ref.dtype)


def _qkv_proj_cross_kernel(xq_ref, xk_ref, xv_ref, w_ref, b_ref, o_ref):
    xq = xq_ref[...].astype(jnp.bfloat16)
    xk = xk_ref[...].astype(jnp.bfloat16)
    xv = xv_ref[...].astype(jnp.bfloat16)
    q = jnp.dot(xq, w_ref[:, 0:HD],
                preferred_element_type=jnp.float32) + b_ref[:, 0:HD]
    k = jnp.dot(xk, w_ref[:, HD:2 * HD],
                preferred_element_type=jnp.float32) + b_ref[:, HD:2 * HD]
    v = jnp.dot(xv, w_ref[:, 2 * HD:3 * HD],
                preferred_element_type=jnp.float32) + b_ref[:, 2 * HD:3 * HD]
    # Lane-dense, lane-aligned stores into the fused [TM, 1536] output.
    o_ref[:, 0:HD] = q.astype(o_ref.dtype)
    o_ref[:, HD:2 * HD] = k.astype(o_ref.dtype)
    o_ref[:, 2 * HD:3 * HD] = v.astype(o_ref.dtype)


def pallas_qkv_proj(q_flat, k_flat, v_flat, w_fused, b_fused, self_attention):
    M, Kd = q_flat.shape
    N = w_fused.shape[1]                      # 3 * H * d_k = 1536
    b2 = b_fused.reshape(1, N)
    w_spec = pl.BlockSpec((Kd, N), lambda i: (0, 0))
    b_spec = pl.BlockSpec((1, N), lambda i: (0, 0))
    if self_attention:
        TM = _row_tile(M, cap=512)
        return pl.pallas_call(
            _qkv_proj_self_kernel,
            out_shape=jax.ShapeDtypeStruct((M, N), jnp.bfloat16),
            grid=(M // TM,),
            in_specs=[pl.BlockSpec((TM, Kd), lambda i: (i, 0)), w_spec, b_spec],
            out_specs=pl.BlockSpec((TM, N), lambda i: (i, 0)),
            compiler_params=pltpu.CompilerParams(
                dimension_semantics=("parallel",)),
        )(q_flat, w_fused, b2)
    # Cross-attention: three distinct input streams -> smaller row tile so the
    # three double-buffered f32 x blocks fit v5e's 16 MiB scoped VMEM default.
    TM = _row_tile(M, cap=256)
    x_spec = pl.BlockSpec((TM, Kd), lambda i: (i, 0))
    return pl.pallas_call(
        _qkv_proj_cross_kernel,
        out_shape=jax.ShapeDtypeStruct((M, N), jnp.bfloat16),
        grid=(M // TM,),
        in_specs=[x_spec, x_spec, x_spec, w_spec, b_spec],
        out_specs=pl.BlockSpec((TM, N), lambda i: (i, 0)),
        compiler_params=pltpu.CompilerParams(
            dimension_semantics=("parallel",)),
    )(q_flat, k_flat, v_flat, w_fused, b2)


# ---------------------------------------------------------------------------
# Kernel 2: scaled-dot-product attention.
#   grid = (B, H/2, S/TQ); 2 heads (128 lanes) per block, query-tiled.
#   Q/K/V are sliced straight out of the fused [B, S, 1536] projection buffer
#   by lane-block offset (no wrapper transposes); K/V index_maps ignore the
#   query axis so they stay VMEM-resident across query tiles.
# ---------------------------------------------------------------------------
def _sdpa_kernel(q_ref, k_ref, v_ref, bias_ref, ctx_ref, attn_ref,
                 *, use_bf16_exp):
    bias = bias_ref[0].astype(jnp.float32)          # (TQ, S) or (1, S)
    ctx_parts = []
    for h in range(HEADS_PER_BLK):                  # static unrolled loop of 2
        lo = h * d_k
        q_h = q_ref[0, :, lo:lo + d_k]              # (TQ, d_k) bf16, pre-scaled
        k_h = k_ref[0, :, lo:lo + d_k]              # (S,  d_k) bf16
        v_h = v_ref[0, :, lo:lo + d_v]              # (S,  d_v) bf16
        # Contract last dims directly (no explicit k.T transpose).
        scores = jax.lax.dot_general(
            q_h, k_h, (((1,), (1,)), ((), ())),
            preferred_element_type=jnp.float32) + bias          # (TQ, S) f32
        m = jnp.max(scores, axis=-1, keepdims=True)
        x = scores - m
        if use_bf16_exp:
            # bf16 exp: EUP is the saturating unit here (v6e/v7x bf16 EUP).
            e32 = jnp.exp(x.astype(jnp.bfloat16)).astype(jnp.float32)
        else:
            e32 = jnp.exp(x)
        l = jnp.sum(e32, axis=-1, keepdims=True)
        p = e32 * pl.reciprocal(l, approx=False)    # (TQ,1) recip: negligible
        attn_ref[0, h] = p
        ctx_parts.append(
            jnp.dot(p.astype(jnp.bfloat16), v_h,
                    preferred_element_type=jnp.float32).astype(ctx_ref.dtype))
    # Single lane-dense (TQ, 128) store back into the [B, S, H*d_v] layout.
    ctx_ref[0] = jnp.concatenate(ctx_parts, axis=-1)
    # TODO(synk): for very long sequences (S >= ~2k) switch to a KV-tiled
    # flash-attention formulation and make the full attn-probs output optional.


def pallas_sdpa(qkv, mask_bias, S):
    B = qkv.shape[0]
    HB = HEADS_PER_BLK * d_k                        # 128 lanes (2 heads)
    TQ = _q_tile(S)
    nq = S // TQ
    k_off = HD // HB                                # lane-block offset of K (4)
    v_off = 2 * HD // HB                            # lane-block offset of V (8)

    q_spec = pl.BlockSpec((1, TQ, HB), lambda b, h2, qi: (b, qi, h2))
    k_spec = pl.BlockSpec((1, S, HB), lambda b, h2, qi: (b, 0, k_off + h2))
    v_spec = pl.BlockSpec((1, S, HB), lambda b, h2, qi: (b, 0, v_off + h2))

    if mask_bias.shape[1] == 1:
        # key-padding mask: DMA (1, 1, S) and broadcast across queries in-kernel
        bias_spec = pl.BlockSpec((1, 1, S), lambda b, h2, qi: (b, 0, 0))
    else:
        bias_spec = pl.BlockSpec((1, TQ, S), lambda b, h2, qi: (b, qi, 0))

    kernel = functools.partial(_sdpa_kernel, use_bf16_exp=_use_bf16_exp())

    return pl.pallas_call(
        kernel,
        out_shape=(
            jax.ShapeDtypeStruct((B, S, n_heads * d_v), jnp.bfloat16),  # context
            jax.ShapeDtypeStruct((B, n_heads, S, S), jnp.float32),      # attn
        ),
        grid=(B, n_heads // HEADS_PER_BLK, nq),
        in_specs=[q_spec, k_spec, v_spec, bias_spec],
        out_specs=(
            pl.BlockSpec((1, TQ, HB), lambda b, h2, qi: (b, qi, h2)),
            pl.BlockSpec((1, HEADS_PER_BLK, TQ, S),
                         lambda b, h2, qi: (b, h2, qi, 0)),
        ),
        compiler_params=pltpu.CompilerParams(
            dimension_semantics=("parallel", "parallel", "parallel")),
    )(qkv, qkv, qkv, mask_bias)


# ---------------------------------------------------------------------------
# Kernel 3: output projection + residual add + LayerNorm, tiled over rows.
# ---------------------------------------------------------------------------
def _out_ln_kernel(ctx_ref, w_ref, b_ref, res_ref, o_ref):
    y = (jnp.dot(ctx_ref[...], w_ref[...], preferred_element_type=jnp.float32)
         + b_ref[...] + res_ref[...])
    mean = jnp.mean(y, axis=-1, keepdims=True)
    var = jnp.mean(jnp.square(y - mean), axis=-1, keepdims=True)
    # LayerNorm with fresh affine params (gamma=1, beta=0), as in the reference.
    o_ref[...] = (y - mean) * jax.lax.rsqrt(var + LN_EPS)


def pallas_out_layernorm(ctx, w_o, b_o, residual):
    M, K = ctx.shape
    N = w_o.shape[1]
    TM = _row_tile(M, cap=512)
    return pl.pallas_call(
        _out_ln_kernel,
        out_shape=jax.ShapeDtypeStruct((M, N), jnp.float32),
        grid=(M // TM,),
        in_specs=[
            pl.BlockSpec((TM, K), lambda i: (i, 0)),
            pl.BlockSpec((K, N), lambda i: (0, 0)),
            pl.BlockSpec((1, N), lambda i: (0, 0)),
            pl.BlockSpec((TM, N), lambda i: (i, 0)),
        ],
        out_specs=pl.BlockSpec((TM, N), lambda i: (i, 0)),
        compiler_params=pltpu.CompilerParams(dimension_semantics=("parallel",)),
    )(ctx, w_o, b_o.reshape(1, N), residual)


# ---------------------------------------------------------------------------
# MultiHeadAttention forward (glue in plain JAX, hot paths in Pallas)
# ---------------------------------------------------------------------------
def multi_head_attention(Q, K, V, attn_mask, params):
    B, S, _ = Q.shape
    M = B * S
    self_attn = (Q is K) and (K is V)

    q_flat = Q.reshape(M, d_model)
    k_flat = K.reshape(M, d_model)
    v_flat = V.reshape(M, d_model)

    # Fold 1/sqrt(d_k) into W_Q / b_Q (one-time host transform), fuse weights.
    w_fused = jnp.concatenate(
        [params["W_Q"] * SCALE, params["W_K"], params["W_V"]],
        axis=1).astype(jnp.bfloat16)                         # (768, 1536)
    b_fused = jnp.concatenate(
        [params["b_Q"] * SCALE, params["b_K"], params["b_V"]],
        axis=0).astype(jnp.float32)                          # (1536,)

    qkv = pallas_qkv_proj(q_flat, k_flat, v_flat, w_fused, b_fused, self_attn)
    qkv = qkv.reshape(B, S, 3 * HD)      # pure reshape, no head-split transposes

    # Additive mask bias (0 keep / -1e9 masked), bf16 to halve mask DMA traffic.
    # Supports either a full (B, S, S) mask or a (B, 1, S) key-padding mask.
    mask_bias = jnp.where(attn_mask.astype(bool),
                          jnp.float32(MASK_FILL),
                          jnp.float32(0.0)).astype(jnp.bfloat16)

    context, attn = pallas_sdpa(qkv, mask_bias, S)

    out = pallas_out_layernorm(
        context.reshape(M, n_heads * d_v),
        params["W_O"].astype(jnp.bfloat16), params["b_O"], q_flat)
    return out.reshape(B, S, d_model), attn


# ---------------------------------------------------------------------------
# Pure-JAX reference (mirrors the PyTorch module) for correctness checking.
# ---------------------------------------------------------------------------
def reference_mha(Q, K, V, attn_mask, params):
    def lin(x, w, b):
        return jnp.einsum("bsd,de->bse", x, w) + b
    B = Q.shape[0]
    q = lin(Q, params["W_Q"], params["b_Q"]).reshape(B, -1, n_heads, d_k).transpose(0, 2, 1, 3)
    k = lin(K, params["W_K"], params["b_K"]).reshape(B, -1, n_heads, d_k).transpose(0, 2, 1, 3)
    v = lin(V, params["W_V"], params["b_V"]).reshape(B, -1, n_heads, d_v).transpose(0, 2, 1, 3)
    scores = jnp.einsum("bhqd,bhkd->bhqk", q, k) / (d_k ** 0.5)
    scores = jnp.where(attn_mask[:, None, :, :].astype(bool), MASK_FILL, scores)
    attn = jax.nn.softmax(scores, axis=-1)
    ctx = jnp.einsum("bhqk,bhkd->bhqd", attn, v).transpose(0, 2, 1, 3)
    ctx = ctx.reshape(B, -1, n_heads * d_v)
    out = ctx @ params["W_O"] + params["b_O"] + Q
    mean = out.mean(-1, keepdims=True)
    var = ((out - mean) ** 2).mean(-1, keepdims=True)
    return (out - mean) / jnp.sqrt(var + LN_EPS), attn


def init_params(key):
    ks = jax.random.split(key, 8)
    scale_in = 1.0 / jnp.sqrt(jnp.float32(d_model))
    scale_out = 1.0 / jnp.sqrt(jnp.float32(n_heads * d_v))
    return {
        "W_Q": jax.random.normal(ks[0], (d_model, n_heads * d_k), jnp.float32) * scale_in,
        "b_Q": jax.random.normal(ks[1], (n_heads * d_k,), jnp.float32) * 0.01,
        "W_K": jax.random.normal(ks[2], (d_model, n_heads * d_k), jnp.float32) * scale_in,
        "b_K": jax.random.normal(ks[3], (n_heads * d_k,), jnp.float32) * 0.01,
        "W_V": jax.random.normal(ks[4], (d_model, n_heads * d_v), jnp.float32) * scale_in,
        "b_V": jax.random.normal(ks[5], (n_heads * d_v,), jnp.float32) * 0.01,
        "W_O": jax.random.normal(ks[6], (n_heads * d_v, d_model), jnp.float32) * scale_out,
        "b_O": jax.random.normal(ks[7], (d_model,), jnp.float32) * 0.01,
    }


if __name__ == "__main__":
    B, S = 2, 8
    key = jax.random.PRNGKey(0)
    kx, kk, kp = jax.random.split(key, 3)

    params = init_params(kp)

    # ---- Case 1: self-attention (the BERT case), full (B, S, S) mask --------
    X = jax.random.normal(kx, (B, S, d_model), jnp.float32)
    key_pad = jnp.zeros((B, S), dtype=bool).at[1, -2:].set(True)
    attn_mask_full = jnp.broadcast_to(key_pad[:, None, :], (B, S, S))

    out1, attn1 = multi_head_attention(X, X, X, attn_mask_full, params)
    jax.block_until_ready((out1, attn1))

    assert out1.shape == (B, S, d_model)
    assert attn1.shape == (B, n_heads, S, S)
    assert bool(jnp.all(jnp.isfinite(out1)))
    assert bool(jnp.all(jnp.isfinite(attn1)))
    # masked key columns of batch 1 must get ~0 probability
    assert bool(jnp.all(attn1[1, :, :, -2:] < 1e-6))

    ref_out1, ref_attn1 = reference_mha(X, X, X, attn_mask_full, params)
    assert bool(jnp.allclose(attn1, ref_attn1, atol=0.06, rtol=0.0))
    assert bool(jnp.allclose(out1, ref_out1, atol=0.15, rtol=0.0))

    # ---- Case 2: cross-attention, (B, 1, S) key-padding mask ----------------
    X2 = jax.random.normal(kk, (B, S, d_model), jnp.float32)
    attn_mask_pad = key_pad[:, None, :]                      # (B, 1, S)

    out2, attn2 = multi_head_attention(X, X2, X2, attn_mask_pad, params)
    jax.block_until_ready((out2, attn2))

    assert bool(jnp.all(jnp.isfinite(out2)))
    assert bool(jnp.all(attn2[1, :, :, -2:] < 1e-6))
    ref_out2, ref_attn2 = reference_mha(X, X2, X2, attn_mask_pad, params)
    assert bool(jnp.allclose(attn2, ref_attn2, atol=0.06, rtol=0.0))
    assert bool(jnp.allclose(out2, ref_out2, atol=0.15, rtol=0.0))

    print("KERNEL_OK")
</pallas_src>

<mosaic_0001>
module attributes {stable_mosaic.version = 11 : i64} {
  func.func @_qkv_proj_self_kernel(%arg0: i32, %arg1: memref<16x768xf32, #tpu.memory_space<vmem>>, %arg2: memref<768x1536xbf16, #tpu.memory_space<vmem>>, %arg3: memref<1x1536xf32, #tpu.memory_space<vmem>>, %arg4: memref<16x1536xbf16, #tpu.memory_space<vmem>>) attributes {dimension_semantics = [#tpu.dimension_semantics<parallel>], iteration_bounds = array<i64: 1>, scalar_prefetch = 0 : i64, scratch_operands = 0 : i64, tpu.core_type = #tpu.core_type<tc>, window_params = [{transform_indices = @transform_0, window_bounds = array<i64: 16, 768>}, {pipeline_mode = #tpu.pipeline_mode<synchronous>, transform_indices = @transform_1, window_bounds = array<i64: 768, 1536>}, {pipeline_mode = #tpu.pipeline_mode<synchronous>, transform_indices = @transform_2, window_bounds = array<i64: 1, 1536>}, {transform_indices = @transform_3, window_bounds = array<i64: 16, 1536>}]} {
    %c0 = arith.constant 0 : index
    %c0_0 = arith.constant 0 : index
    %0 = vector.load %arg1[%c0, %c0_0] : memref<16x768xf32, #tpu.memory_space<vmem>>, vector<16x768xf32>
    %1 = arith.truncf %0 : vector<16x768xf32> to vector<16x768xbf16>
    %c0_1 = arith.constant 0 : index
    %c0_2 = arith.constant 0 : index
    %2 = vector.load %arg2[%c0_1, %c0_2] : memref<768x1536xbf16, #tpu.memory_space<vmem>>, vector<768x1536xbf16>
    %cst = arith.constant dense<0.000000e+00> : vector<16x1536xf32>
    %3 = tpu.matmul %1, %2, %cst {dimension_numbers = #tpu.dot_dimension_numbers<[1], [0], [0], [1], [0, 0, 1, 1], [], []>} : vector<16x768xbf16>, vector<768x1536xbf16>, vector<16x1536xf32> -> vector<16x1536xf32>
    %c0_3 = arith.constant 0 : index
    %c0_4 = arith.constant 0 : index
    %4 = vector.load %arg3[%c0_3, %c0_4] : memref<1x1536xf32, #tpu.memory_space<vmem>>, vector<1x1536xf32>
    %5 = vector.broadcast %4 : vector<1x1536xf32> to vector<16x1536xf32>
    %6 = arith.addf %3, %5 : vector<16x1536xf32>
    %7 = arith.truncf %6 : vector<16x1536xf32> to vector<16x1536xbf16>
    %c0_5 = arith.constant 0 : index
    %c0_6 = arith.constant 0 : index
    %8 = vector.load %arg4[%c0_5, %c0_6] : memref<16x1536xbf16, #tpu.memory_space<vmem>>, vector<16x1536xbf16>
    tpu.vector_store %arg4[%c0_5, %c0_6], %7 {strides = array<i32>} : memref<16x1536xbf16, #tpu.memory_space<vmem>>, vector<16x1536xbf16>,
    return
  }
  func.func @transform_0(%arg0: i32) -> (i32, i32) {
    %c0_i32 = arith.constant 0 : i32
    %c0_i32_0 = arith.constant 0 : i32
    return %arg0, %c0_i32 : i32, i32
  }
  func.func @transform_1(%arg0: i32) -> (i32, i32) {
    %c0_i32 = arith.constant 0 : i32
    %c0_i32_0 = arith.constant 0 : i32
    %c0_i32_1 = arith.constant 0 : i32
    return %c0_i32, %c0_i32_0 : i32, i32
  }
  func.func @transform_2(%arg0: i32) -> (i32, i32) {
    %c0_i32 = arith.constant 0 : i32
    %c0_i32_0 = arith.constant 0 : i32
    %c0_i32_1 = arith.constant 0 : i32
    return %c0_i32, %c0_i32_0 : i32, i32
  }
  func.func @transform_3(%arg0: i32) -> (i32, i32) {
    %c0_i32 = arith.constant 0 : i32
    %c0_i32_0 = arith.constant 0 : i32
    return %arg0, %c0_i32 : i32, i32
  }
}

</mosaic_0001>

<bundles_post_ra>
// kernel: tpu_custom_call.1
= control target key start
LH: loop header
LB: loop body
LE: loop exit
PB: predicated region body
PF: predicated region fallthrough
CT: control target
= control target key end

     0   :  { %8 = vsyncpa [#allocation3], 0  ;;  %s6278_s0 = inlined_call_operand.hbm [shape: f32[16,768], index: 0, kind: input, shape index: {}]   ;;  %s6279_s1 = inlined_call_operand.hbm [shape: bf16[768,1536], index: 1, kind: input, shape index: {}]   ;;  %s6280_s2 = inlined_call_operand.hbm [shape: f32[1,1536], index: 2, kind: input, shape index: {}]   ;;  %s6281_s3 = inlined_call_operand.hbm [shape: bf16[16,1536], index: 3, kind: output, shape index: {}]  }
   0x1   :  { %9 = vsyncpa [#allocation6], 0 }
   0x2   :  { %10 = vsyncpa [#allocation4], 0  ;;  %s6104_s12 = smov [#allocation5]   ;;  %s6105_s14 = smov [#allocation2]  }
   0x3   :  { %s28_s13 = sshll.u32 %s6104_s12, 4  ;;  %s16_s15 = sshll.u32 %s6105_s14, 4  ;;  %s29_s13 = int_to_ptr.vmem [resolvable:$true] %s28_s13  ;;  %s6130_s15 = int_to_ptr.vmem [resolvable:$true] %s16_s15 }
   0x4   :  { %s6010_s18 = scalar_lea.hbm %s6279_s1, 73728 }
   0x5   :  { %p6011_p0 = scmp.ne.s32.totalorder %s6279_s1, %s6010_s18  ;;  %p6014_p1 = scmp.lt.u32.totalorder %s6010_s18, %s6279_s1 }
   0x7   :  { %p6016_p2 = pnand %p6014_p1, %p6011_p0 }
   0x9   :  { %6019 = shalt.err (!%p6016_p2)
}
   0xa   :  { %s6020_s23 = scalar_lea.vmem %s29_s13, 73728  ;;  %p6025_p4 = scmp.lt.s32.totalorder %s29_s13, %s29_s13 }
   0xb   :  { %p6021_p3 = scmp.ne.s32.totalorder %s29_s13, %s6020_s23  ;;  %p6026_p5 = scmp.lt.s32.totalorder %s6020_s23, %s6020_s23 }
   0xd   :  { %p6027_p6 = por %p6026_p5, %p6025_p4 }
   0xf   :  { %p6028_p7 = pnand %p6027_p6, %p6021_p3 }
  0x11   :  { %6031 = shalt.err (!%p6028_p7)
}
  0x12   :  { %s6106_s24 = smov 768   ;;  %s6107_s25 = smov 48  }
  0x13   :  { %34 = dma.hbm_to_vmem [thread:$0]  %s6279_s1, 73728, %s29_s13, [#allocation6], %s6106_s24, %s6106_s24, %s6107_s25  }
  0x14   :  { %s6032_s30 = scalar_lea.hbm %s6278_s0, 1536 }
  0x15   :  { %p6033_p8 = scmp.ne.s32.totalorder %s6278_s0, %s6032_s30  ;;  %p6036_p9 = scmp.lt.u32.totalorder %s6032_s30, %s6278_s0 }
  0x17   :  { %p6038_p10 = pnand %p6036_p9, %p6033_p8 }
  0x19   :  { %6041 = shalt.err (!%p6038_p10)
}
  0x1a   :  { %s6042_s8 = scalar_lea.vmem %s6130_s15, 1536  ;;  %p6047_p12 = scmp.lt.s32.totalorder %s6130_s15, %s6130_s15 }
  0x1b   :  { %p6043_p11 = scmp.ne.s32.totalorder %s6130_s15, %s6042_s8  ;;  %p6048_p13 = scmp.lt.s32.totalorder %s6042_s8, %s6042_s8 }
  0x1d   :  { %p6049_p0 = por %p6048_p13, %p6047_p12 }
  0x1f   :  { %p6050_p1 = pnand %p6049_p0, %p6043_p11 }
  0x21   :  { %6053 = shalt.err (!%p6050_p1)
}
  0x22   :  { %22 = dma.hbm_to_vmem [thread:$0]  %s6278_s0, 1536, %s6130_s15, [#allocation3], %s6106_s24, %s6106_s24, %s6107_s25  }
  0x23   :  { %s6108_s10 = smov [#allocation7]   ;;  %s6054_s14 = scalar_lea.hbm %s6280_s2, 192 }
  0x24   :  { %s41_s11 = sshll.u32 %s6108_s10, 4  ;;  %p6055_p2 = scmp.ne.s32.totalorder %s6280_s2, %s6054_s14  ;;  %s42_s11 = int_to_ptr.vmem [resolvable:$true] %s41_s11 }
  0x25   :  { %p6058_p3 = scmp.lt.u32.totalorder %s6054_s14, %s6280_s2 }
  0x27   :  { %p6060_p4 = pnand %p6058_p3, %p6055_p2 }
  0x29   :  { %6063 = shalt.err (!%p6060_p4)
}
  0x2a   :  { %s6064_s20 = scalar_lea.vmem %s42_s11, 192  ;;  %p6069_p6 = scmp.lt.s32.totalorder %s42_s11, %s42_s11 }
  0x2b   :  { %p6065_p5 = scmp.ne.s32.totalorder %s42_s11, %s6064_s20  ;;  %p6070_p7 = scmp.lt.s32.totalorder %s6064_s20, %s6064_s20 }
  0x2d   :  { %p6071_p8 = por %p6070_p7, %p6069_p6 }
  0x2f   :  { %p6072_p9 = pnand %p6071_p8, %p6065_p5 }
  0x31   :  { %6075 = shalt.err (!%p6072_p9)
}
  0x32   :  { %44 = dma.hbm_to_vmem [thread:$0]  %s6280_s2, 192, %s42_s11, [#allocation6]  }
  0x33   :  { %6098 = dma.done.wait [#allocation3], 1536  }
  0x34   :  { %6099 = vsyncadd [#allocation3], 4294965760 }
  0x35   :  { %6100 = dma.done.wait [#allocation6], 73920  }
  0x36   :  { %6101 = vsyncadd [#allocation6], 4294893376  ;;  %v5146_v0 = vld [vmem:[#allocation5 + $0x4] ss:$48 sps:$4 sm:$0xff]   ;;  %v5148_v1 = vld [vmem:[#allocation5 + $0xc] ss:$48 sps:$4 sm:$0xff]  }
  0x37   :  { %3592 = vmatprep.subr.bf16.mxu0 %v5146_v0  ;;  %v5150_v2 = vld [vmem:[#allocation5] ss:$48 sps:$4 sm:$0xff]   ;;  %v5151_v3 = vld [vmem:[#allocation5 + $0x8] ss:$48 sps:$4 sm:$0xff]   ;;  %3721 = vmatprep.subr.bf16.mxu1 %v5148_v1  ;;  %v5152_v4 = vld [vmem:[#allocation5 + $0x64] ss:$48 sps:$4 sm:$0xff]  }
  0x38   :  { %3593 = vmatpush1.bf16.msra.mxu0 %v5150_v2  ;;  %3722 = vmatpush1.bf16.msra.mxu1 %v5151_v3  ;;  %v5154_v5 = vld [vmem:[#allocation5 + $0x6c] ss:$48 sps:$4 sm:$0xff]   ;;  %v5156_v6 = vld [vmem:[#allocation5 + $0x60] ss:$48 sps:$4 sm:$0xff]   ;;  %v5157_v7 = vld [vmem:[#allocation5 + $0x68] ss:$48 sps:$4 sm:$0xff]  }
  0x39   :  { %3594 = vmatprep.subr.bf16.mxu0 %v5152_v4  ;;  %3723 = vmatprep.subr.bf16.mxu1 %v5154_v5  ;;  %v5158_v8 = vld [vmem:[#allocation5 + $0xc4] ss:$48 sps:$4 sm:$0xff]   ;;  %v5160_v9 = vld [vmem:[#allocation5 + $0xcc] ss:$48 sps:$4 sm:$0xff]   ;;  %v5162_v10 = vld [vmem:[#allocation5 + $0xc0] ss:$48 sps:$4 sm:$0xff]  }
  0x3a   :  { %v5163_v11 = vld [vmem:[#allocation5 + $0xc8] ss:$48 sps:$4 sm:$0xff]   ;;  %v5164_v12 = vld [vmem:[#allocation5 + $0x124] ss:$48 sps:$4 sm:$0xff]   ;;  %v5166_v13 = vld [vmem:[#allocation5 + $0x12c] ss:$48 sps:$4 sm:$0xff]  }
  0x3b   :  { %v5168_v14 = vld [vmem:[#allocation5 + $0x120] ss:$48 sps:$4 sm:$0xff]   ;;  %v5169_v15 = vld [vmem:[#allocation5 + $0x128] ss:$48 sps:$4 sm:$0xff]   ;;  %v5170_v16 = vld [vmem:[#allocation5 + $0x184] ss:$48 sps:$4 sm:$0xff]  }
  0x3c   :  { %3595 = vmatpush1.bf16.msra.mxu0 %v5156_v6  ;;  %3724 = vmatpush1.bf16.msra.mxu1 %v5157_v7  ;;  %v5172_v17 = vld [vmem:[#allocation5 + $0x18c] ss:$48 sps:$4 sm:$0xff]   ;;  %v5174_v18 = vld [vmem:[#allocation5 + $0x180] ss:$48 sps:$4 sm:$0xff]   ;;  %v5175_v19 = vld [vmem:[#allocation5 + $0x188] ss:$48 sps:$4 sm:$0xff]  }
  0x3d   :  { %3596 = vmatprep.subr.bf16.mxu0 %v5158_v8  ;;  %3725 = vmatprep.subr.bf16.mxu1 %v5160_v9  ;;  %v5176_v20 = vld [vmem:[#allocation5 + $0x1e4] ss:$48 sps:$4 sm:$0xff]   ;;  %v5178_v21 = vld [vmem:[#allocation5 + $0x1ec] ss:$48 sps:$4 sm:$0xff]   ;;  %v5180_v22 = vld [vmem:[#allocation5 + $0x1e0] ss:$48 sps:$4 sm:$0xff]  }
  0x3e   :  { %v5181_v23 = vld [vmem:[#allocation5 + $0x1e8] ss:$48 sps:$4 sm:$0xff]   ;;  %v5182_v24 = vld [vmem:[#allocation5 + $0x244] ss:$48 sps:$4 sm:$0xff]   ;;  %v5184_v25 = vld [vmem:[#allocation5 + $0x24c] ss:$48 sps:$4 sm:$0xff]  }
  0x3f   :  { %v5186_v26 = vld [vmem:[#allocation5 + $0x240] ss:$48 sps:$4 sm:$0xff]   ;;  %v5187_v27 = vld [vmem:[#allocation5 + $0x248] ss:$48 sps:$4 sm:$0xff]   ;;  %v5188_v28 = vld [vmem:[#allocation5 + $0x2a4] ss:$48 sps:$4 sm:$0xff]  }
  0x40   :  { %3597 = vmatpush1.bf16.msra.mxu0 %v5162_v10  ;;  %3726 = vmatpush1.bf16.msra.mxu1 %v5163_v11  ;;  %v5190_v29 = vld [vmem:[#allocation5 + $0x2ac] ss:$48 sps:$4 sm:$0xff]   ;;  %v5192_v30 = vld [vmem:[#allocation5 + $0x2a0] ss:$48 sps:$4 sm:$0xff]   ;;  %v5193_v31 = vld [vmem:[#allocation5 + $0x2a8] ss:$48 sps:$4 sm:$0xff]  }
  0x41   :  { %3598 = vmatprep.subr.bf16.mxu0 %v5164_v12  ;;  %3727 = vmatprep.subr.bf16.mxu1 %v5166_v13  ;;  %v5194_v32 = vld [vmem:[#allocation5 + $0x304] ss:$48 sps:$4 sm:$0xff]   ;;  %v5196_v33 = vld [vmem:[#allocation5 + $0x30c] ss:$48 sps:$4 sm:$0xff]   ;;  %v5198_v34 = vld [vmem:[#allocation5 + $0x300] ss:$48 sps:$4 sm:$0xff]  }
  0x42   :  { %v5199_v35 = vld [vmem:[#allocation5 + $0x308] ss:$48 sps:$4 sm:$0xff]   ;;  %v5200_v36 = vld [vmem:[#allocation5 + $0x364] ss:$48 sps:$4 sm:$0xff]   ;;  %v5202_v37 = vld [vmem:[#allocation5 + $0x36c] ss:$48 sps:$4 sm:$0xff]  }
  0x43   :  { %v5204_v38 = vld [vmem:[#allocation5 + $0x360] ss:$48 sps:$4 sm:$0xff]   ;;  %v5205_v39 = vld [vmem:[#allocation5 + $0x368] ss:$48 sps:$4 sm:$0xff]   ;;  %v5206_v40 = vld [vmem:[#allocation5 + $0x3c4] ss:$48 sps:$4 sm:$0xff]  }
  0x44   :  { %3599 = vmatpush1.bf16.msra.mxu0 %v5168_v14  ;;  %3728 = vmatpush1.bf16.msra.mxu1 %v5169_v15  ;;  %v5208_v41 = vld [vmem:[#allocation5 + $0x3cc] ss:$48 sps:$4 sm:$0xff]   ;;  %v5210_v42 = vld [vmem:[#allocation5 + $0x3c0] ss:$48 sps:$4 sm:$0xff]   ;;  %v5211_v43 = vld [vmem:[#allocation5 + $0x3c8] ss:$48 sps:$4 sm:$0xff]  }
  0x45   :  { %3600 = vmatprep.subr.bf16.mxu0 %v5170_v16  ;;  %3729 = vmatprep.subr.bf16.mxu1 %v5172_v17  ;;  %v5212_v44 = vld [vmem:[#allocation5 + $0x424] ss:$48 sps:$4 sm:$0xff]   ;;  %v5214_v45 = vld [vmem:[#allocation5 + $0x42c] ss:$48 sps:$4 sm:$0xff]   ;;  %v5216_v48 = vld [vmem:[#allocation5 + $0x420] ss:$48 sps:$4 sm:$0xff]  }
  0x46   :  { %v55_v46 = vld [vmem:[#allocation2 + $0x8] sm:$0xff]  ;;  %v61_v47 = vld [vmem:[#allocation2 + $0x38] sm:$0xff]  ;;  %v5218_v51 = vld [vmem:[#allocation5 + $0x484] ss:$48 sps:$4 sm:$0xff]   ;;  %s6109_s2 = smov [#allocation8]  }
  0x47   :  { %v5217_v49 = vld [vmem:[#allocation5 + $0x428] ss:$48 sps:$4 sm:$0xff]   ;;  %v6179_v50 = vpack.c.bf16 %v61_v47, %v55_v46  ;;  %v5220_v52 = vld [vmem:[#allocation5 + $0x48c] ss:$48 sps:$4 sm:$0xff]   ;;  %v5222_v53 = vld [vmem:[#allocation5 + $0x480] ss:$48 sps:$4 sm:$0xff]  }
  0x48   :  { %3601 = vmatpush1.bf16.msra.mxu0 %v5174_v18  ;;  %3730 = vmatpush1.bf16.msra.mxu1 %v5175_v19  ;;  %v5223_v54 = vld [vmem:[#allocation5 + $0x488] ss:$48 sps:$4 sm:$0xff]   ;;  %v5224_v55 = vld [vmem:[#allocation5 + $0x4e4] ss:$48 sps:$4 sm:$0xff]   ;;  %v5226_v56 = vld [vmem:[#allocation5 + $0x4ec] ss:$48 sps:$4 sm:$0xff]  }
  0x49   :  { %3602 = vmatprep.subr.bf16.mxu0 %v5176_v20  ;;  %3731 = vmatprep.subr.bf16.mxu1 %v5178_v21  ;;  %v5228_v57 = vld [vmem:[#allocation5 + $0x4e0] ss:$48 sps:$4 sm:$0xff]   ;;  %v5229_v58 = vld [vmem:[#allocation5 + $0x4e8] ss:$48 sps:$4 sm:$0xff]   ;;  %v5230_v59 = vld [vmem:[#allocation5 + $0x544] ss:$48 sps:$4 sm:$0xff]  }
  0x4a   :  { %3624 = vmatprep.mubr.bf16.mxu0 %v6179_v50  ;;  %3753 = vmatprep.mubr.bf16.mxu1 %v6179_v50  ;;  %v5232_v60 = vld [vmem:[#allocation5 + $0x54c] ss:$48 sps:$4 sm:$0xff]   ;;  %v5234_v61 = vld [vmem:[#allocation5 + $0x540] ss:$48 sps:$4 sm:$0xff]   ;;  %v5235_v62 = vld [vmem:[#allocation5 + $0x548] ss:$48 sps:$4 sm:$0xff]  }
  0x4b   :  { %v5236_v63 = vld [vmem:[#allocation5 + $0x5a4] ss:$48 sps:$4 sm:$0xff]   ;;  %v5238_v0 = vld [vmem:[#allocation5 + $0x5ac] ss:$48 sps:$4 sm:$0xff]   ;;  %v5240_v1 = vld [vmem:[#allocation5 + $0x5a0] ss:$48 sps:$4 sm:$0xff]  }
  0x4c   :  { %3603 = vmatpush1.bf16.msra.mxu0 %v5180_v22  ;;  %3732 = vmatpush1.bf16.msra.mxu1 %v5181_v23  ;;  %v5241_v2 = vld [vmem:[#allocation5 + $0x5a8] ss:$48 sps:$4 sm:$0xff]   ;;  %v5244_v3 = vld [vmem:[#allocation5 + $0x604] ss:$48 sps:$4 sm:$0xff]   ;;  %v5247_v6 = vld [vmem:[#allocation5 + $0x60c] ss:$48 sps:$4 sm:$0xff]  }
  0x4d   :  { %3604 = vmatprep.subr.bf16.mxu0 %v5182_v24  ;;  %3733 = vmatprep.subr.bf16.mxu1 %v5184_v25  ;;  %v54_v4 = vld [vmem:[#allocation2] sm:$0xff]  ;;  %v60_v5 = vld [vmem:[#allocation2 + $0x30] sm:$0xff]  ;;  %v5245_v8 = vld [vmem:[#allocation5 + $0x608] ss:$48 sps:$4 sm:$0xff]   ;;  %s4455_s21 = sshll.u32 %s6109_s2, 4  ;;  %s4456_s21 = int_to_ptr.vmem [resolvable:$true] %s4455_s21 }
  0x4e   :  { %v5242_v7 = vld [vmem:[#allocation5 + $0x600] ss:$48 sps:$4 sm:$0xff]   ;;  %v6183_v9 = vpack.c.bf16 %v60_v5, %v54_v4  ;;  %v5250_v10 = vld [vmem:[#allocation5 + $0x664] ss:$48 sps:$4 sm:$0xff]   ;;  %v5253_v11 = vld [vmem:[#allocation5 + $0x66c] ss:$48 sps:$4 sm:$0xff]   ;;  %p6081_p11 = scmp.lt.s32.totalorder %s4456_s21, %s4456_s21 }
  0x4f   :  { %v5248_v12 = vld [vmem:[#allocation5 + $0x660] ss:$48 sps:$4 sm:$0xff]   ;;  %v5251_v13 = vld [vmem:[#allocation5 + $0x668] ss:$48 sps:$4 sm:$0xff]   ;;  %v5256_v14 = vld [vmem:[#allocation5 + $0x6c4] ss:$48 sps:$4 sm:$0xff]  }
  0x50   :  { %3605 = vmatpush1.bf16.msra.mxu0 %v5186_v26  ;;  %3734 = vmatpush1.bf16.msra.mxu1 %v5187_v27  ;;  %v5259_v15 = vld [vmem:[#allocation5 + $0x6cc] ss:$48 sps:$4 sm:$0xff]   ;;  %v5254_v16 = vld [vmem:[#allocation5 + $0x6c0] ss:$48 sps:$4 sm:$0xff]   ;;  %v5257_v17 = vld [vmem:[#allocation5 + $0x6c8] ss:$48 sps:$4 sm:$0xff]  }
  0x51   :  { %3606 = vmatprep.subr.bf16.mxu0 %v5188_v28  ;;  %3735 = vmatprep.subr.bf16.mxu1 %v5190_v29  ;;  %v5262_v18 = vld [vmem:[#allocation5 + $0x724] ss:$48 sps:$4 sm:$0xff]   ;;  %v5265_v19 = vld [vmem:[#allocation5 + $0x72c] ss:$48 sps:$4 sm:$0xff]   ;;  %v5260_v20 = vld [vmem:[#allocation5 + $0x720] ss:$48 sps:$4 sm:$0xff]  }
  0x52   :  { %v5263_v21 = vld [vmem:[#allocation5 + $0x728] ss:$48 sps:$4 sm:$0xff]   ;;  %v5268_v22 = vld [vmem:[#allocation5 + $0x784] ss:$48 sps:$4 sm:$0xff]   ;;  %v5271_v23 = vld [vmem:[#allocation5 + $0x78c] ss:$48 sps:$4 sm:$0xff]  }
  0x53   :  { %v5266_v24 = vld [vmem:[#allocation5 + $0x780] ss:$48 sps:$4 sm:$0xff]   ;;  %v5269_v25 = vld [vmem:[#allocation5 + $0x788] ss:$48 sps:$4 sm:$0xff]   ;;  %v5274_v26 = vld [vmem:[#allocation5 + $0x7e4] ss:$48 sps:$4 sm:$0xff]  }
  0x54   :  { %3607 = vmatpush1.bf16.msra.mxu0 %v5192_v30  ;;  %3736 = vmatpush1.bf16.msra.mxu1 %v5193_v31  ;;  %v5277_v27 = vld [vmem:[#allocation5 + $0x7ec] ss:$48 sps:$4 sm:$0xff]   ;;  %v5272_v28 = vld [vmem:[#allocation5 + $0x7e0] ss:$48 sps:$4 sm:$0xff]   ;;  %v5275_v29 = vld [vmem:[#allocation5 + $0x7e8] ss:$48 sps:$4 sm:$0xff]  }
  0x55   :  { %3608 = vmatprep.subr.bf16.mxu0 %v5194_v32  ;;  %3737 = vmatprep.subr.bf16.mxu1 %v5196_v33  ;;  %v5280_v30 = vld [vmem:[#allocation5 + $0x844] ss:$48 sps:$4 sm:$0xff]   ;;  %v5283_v31 = vld [vmem:[#allocation5 + $0x84c] ss:$48 sps:$4 sm:$0xff]   ;;  %v5296_v47 = vld [vmem:[#allocation5 + $0x960] ss:$48 sps:$4 sm:$0xff]  }
  0x56   :  { %v57_v32 = vld [vmem:[#allocation2 + $0x18] sm:$0xff]  ;;  %v63_v33 = vld [vmem:[#allocation2 + $0x48] sm:$0xff]  ;;  %v5326_v4 = vld [vmem:[#allocation5 + $0xb40] ss:$48 sps:$4 sm:$0xff]   ;;  %s6076_s22 = scalar_lea.vmem %s4456_s21, 1536 }
  0x57   :  { %v5301_v46 = vld [vmem:[#allocation5 + $0x96c] ss:$48 sps:$4 sm:$0xff]   ;;  %v5329_v5 = vld [vmem:[#allocation5 + $0xb48] ss:$48 sps:$4 sm:$0xff]   ;;  %p6077_p10 = scmp.ne.s32.totalorder %s4456_s21, %s6076_s22  ;;  %p6082_p12 = scmp.lt.s32.totalorder %s6076_s22, %s6076_s22 }
  0x58   :  { %3609 = vmatpush1.bf16.msra.mxu0 %v5198_v34  ;;  %3738 = vmatpush1.bf16.msra.mxu1 %v5199_v35  ;;  %v5278_v34 = vld [vmem:[#allocation5 + $0x840] ss:$48 sps:$4 sm:$0xff]   ;;  %v5281_v35 = vld [vmem:[#allocation5 + $0x848] ss:$48 sps:$4 sm:$0xff]  }
  0x59   :  { %3610 = vmatprep.subr.bf16.mxu0 %v5200_v36  ;;  %3739 = vmatprep.subr.bf16.mxu1 %v5202_v37  ;;  %v6187_v36 = vpack.c.bf16 %v63_v33, %v57_v32  ;;  %v5286_v37 = vld [vmem:[#allocation5 + $0x8a4] ss:$48 sps:$4 sm:$0xff]   ;;  %v5359_v32 = vld [vmem:[#allocation5 + $0xd28] ss:$48 sps:$4 sm:$0xff]   ;;  %p6083_p13 = por %p6082_p12, %p6081_p11 }
  0x5a   :  { %v5364_v33 = vld [vmem:[#allocation5 + $0xd84] ss:$48 sps:$4 sm:$0xff]  }
  0x5b   :  { %p6084_p0 = pnand %p6083_p13, %p6077_p10 }
  0x5c   :  { %3611 = vmatpush1.bf16.msra.mxu0 %v5204_v38  ;;  %3740 = vmatpush1.bf16.msra.mxu1 %v5205_v39  ;;  %v5289_v38 = vld [vmem:[#allocation5 + $0x8ac] ss:$48 sps:$4 sm:$0xff]   ;;  %v5284_v39 = vld [vmem:[#allocation5 + $0x8a0] ss:$48 sps:$4 sm:$0xff]  }
  0x5d   :  { %3612 = vmatprep.subr.bf16.mxu0 %v5206_v40  ;;  %3741 = vmatprep.subr.bf16.mxu1 %v5208_v41  ;;  %v5287_v40 = vld [vmem:[#allocation5 + $0x8a8] ss:$48 sps:$4 sm:$0xff]   ;;  %v5292_v41 = vld [vmem:[#allocation5 + $0x904] ss:$48 sps:$4 sm:$0xff]  }
  0x60   :  { %3613 = vmatpush1.bf16.msra.mxu0 %v5210_v42  ;;  %3742 = vmatpush1.bf16.msra.mxu1 %v5211_v43  ;;  %v5295_v42 = vld [vmem:[#allocation5 + $0x90c] ss:$48 sps:$4 sm:$0xff]   ;;  %v5290_v43 = vld [vmem:[#allocation5 + $0x900] ss:$48 sps:$4 sm:$0xff]  }
  0x61   :  { %3614 = vmatprep.subr.bf16.mxu0 %v5212_v44  ;;  %3743 = vmatprep.subr.bf16.mxu1 %v5214_v45  ;;  %v5293_v44 = vld [vmem:[#allocation5 + $0x908] ss:$48 sps:$4 sm:$0xff]   ;;  %v5298_v45 = vld [vmem:[#allocation5 + $0x964] ss:$48 sps:$4 sm:$0xff]  }
  0x64   :  { %3615 = vmatpush1.bf16.msra.mxu0 %v5216_v48  ;;  %3744 = vmatpush1.bf16.msra.mxu1 %v5217_v49  ;;  %v5299_v48 = vld [vmem:[#allocation5 + $0x968] ss:$48 sps:$4 sm:$0xff]   ;;  %v5304_v49 = vld [vmem:[#allocation5 + $0x9c4] ss:$48 sps:$4 sm:$0xff]  }
  0x65   :  { %3616 = vmatprep.subr.bf16.mxu0 %v5218_v51  ;;  %3745 = vmatprep.subr.bf16.mxu1 %v5220_v52  ;;  %v5307_v51 = vld [vmem:[#allocation5 + $0x9cc] ss:$48 sps:$4 sm:$0xff]   ;;  %v5302_v52 = vld [vmem:[#allocation5 + $0x9c0] ss:$48 sps:$4 sm:$0xff]  }
  0x68   :  { %3617 = vmatpush1.bf16.msra.mxu0 %v5222_v53  ;;  %3746 = vmatpush1.bf16.msra.mxu1 %v5223_v54  ;;  %v5305_v53 = vld [vmem:[#allocation5 + $0x9c8] ss:$48 sps:$4 sm:$0xff]   ;;  %v5310_v54 = vld [vmem:[#allocation5 + $0xa24] ss:$48 sps:$4 sm:$0xff]  }
  0x69   :  { %3618 = vmatprep.subr.bf16.mxu0 %v5224_v55  ;;  %3747 = vmatprep.subr.bf16.mxu1 %v5226_v56  ;;  %v5313_v55 = vld [vmem:[#allocation5 + $0xa2c] ss:$48 sps:$4 sm:$0xff]   ;;  %v5308_v56 = vld [vmem:[#allocation5 + $0xa20] ss:$48 sps:$4 sm:$0xff]  }
  0x6c   :  { %3619 = vmatpush1.bf16.msra.mxu0 %v5228_v57  ;;  %3748 = vmatpush1.bf16.msra.mxu1 %v5229_v58  ;;  %v5311_v57 = vld [vmem:[#allocation5 + $0xa28] ss:$48 sps:$4 sm:$0xff]   ;;  %v5316_v58 = vld [vmem:[#allocation5 + $0xa84] ss:$48 sps:$4 sm:$0xff]  }
  0x6d   :  { %3620 = vmatprep.subr.bf16.mxu0 %v5230_v59  ;;  %3749 = vmatprep.subr.bf16.mxu1 %v5232_v60  ;;  %v5319_v59 = vld [vmem:[#allocation5 + $0xa8c] ss:$48 sps:$4 sm:$0xff]   ;;  %v5314_v60 = vld [vmem:[#allocation5 + $0xa80] ss:$48 sps:$4 sm:$0xff]  }
  0x70   :  { %3621 = vmatpush1.bf16.msra.mxu0 %v5234_v61  ;;  %3750 = vmatpush1.bf16.msra.mxu1 %v5235_v62  ;;  %v5317_v61 = vld [vmem:[#allocation5 + $0xa88] ss:$48 sps:$4 sm:$0xff]   ;;  %v5322_v62 = vld [vmem:[#allocation5 + $0xae4] ss:$48 sps:$4 sm:$0xff]  }
  0x71   :  { %3622 = vmatprep.subr.bf16.mxu0 %v5236_v63  ;;  %3751 = vmatprep.subr.bf16.mxu1 %v5238_v0  ;;  %v5325_v63 = vld [vmem:[#allocation5 + $0xaec] ss:$48 sps:$4 sm:$0xff]   ;;  %v5320_v0 = vld [vmem:[#allocation5 + $0xae0] ss:$48 sps:$4 sm:$0xff]  }
  0x74   :  { %3623 = vmatpush1.bf16.msra.mxu0 %v5240_v1  ;;  %3752 = vmatpush1.bf16.msra.mxu1 %v5241_v2  ;;  %v5323_v1 = vld [vmem:[#allocation5 + $0xae8] ss:$48 sps:$4 sm:$0xff]   ;;  %v5328_v2 = vld [vmem:[#allocation5 + $0xb44] ss:$48 sps:$4 sm:$0xff]  }
  0x75   :  { %3635 = vmatprep.subr.bf16.mxu0 %v5244_v3  ;;  %3764 = vmatprep.subr.bf16.mxu1 %v5247_v6  ;;  %v5331_v3 = vld [vmem:[#allocation5 + $0xb4c] ss:$48 sps:$4 sm:$0xff]   ;;  %v5334_v6 = vld [vmem:[#allocation5 + $0xba4] ss:$48 sps:$4 sm:$0xff]  }
  0x77   :  { %3625 = vmatmul.mubr.bf16.vlgmr.msra.gmra.mrb[0].mxu0 %v6183_v9  ;;  %3754 = vmatmul.mubr.bf16.vlgmr.msra.gmra.mrb[0].mxu1 %v6183_v9 }
  0x78   :  { %3636 = vmatpush1.bf16.msra.mxu0 %v5242_v7  ;;  %3765 = vmatpush1.bf16.msra.mxu1 %v5245_v8  ;;  %v5337_v7 = vld [vmem:[#allocation5 + $0xbac] ss:$48 sps:$4 sm:$0xff]   ;;  %v5332_v8 = vld [vmem:[#allocation5 + $0xba0] ss:$48 sps:$4 sm:$0xff]  }
  0x79   :  { %3637 = vmatprep.subr.bf16.mxu0 %v5250_v10  ;;  %3766 = vmatprep.subr.bf16.mxu1 %v5253_v11  ;;  %v5335_v10 = vld [vmem:[#allocation5 + $0xba8] ss:$48 sps:$4 sm:$0xff]   ;;  %v5340_v11 = vld [vmem:[#allocation5 + $0xc04] ss:$48 sps:$4 sm:$0xff]  }
  0x7a   :  { %3667 = vmatprep.mubr.bf16.mxu0 %v6187_v36  ;;  %3796 = vmatprep.mubr.bf16.mxu1 %v6187_v36 }
  0x7c   :  { %3638 = vmatpush1.bf16.msra.mxu0 %v5248_v12  ;;  %3767 = vmatpush1.bf16.msra.mxu1 %v5251_v13  ;;  %v56_v12 = vld [vmem:[#allocation2 + $0x10] sm:$0xff]  ;;  %v62_v13 = vld [vmem:[#allocation2 + $0x40] sm:$0xff] }
  0x7d   :  { %3639 = vmatprep.subr.bf16.mxu0 %v5256_v14  ;;  %3768 = vmatprep.subr.bf16.mxu1 %v5259_v15  ;;  %v5343_v14 = vld [vmem:[#allocation5 + $0xc0c] ss:$48 sps:$4 sm:$0xff]   ;;  %v5338_v15 = vld [vmem:[#allocation5 + $0xc00] ss:$48 sps:$4 sm:$0xff]  }
  0x80   :  { %3640 = vmatpush1.bf16.msra.mxu0 %v5254_v16  ;;  %3769 = vmatpush1.bf16.msra.mxu1 %v5257_v17  ;;  %v5341_v16 = vld [vmem:[#allocation5 + $0xc08] ss:$48 sps:$4 sm:$0xff]   ;;  %v6191_v17 = vpack.c.bf16 %v62_v13, %v56_v12  ;;  %v5424_v12 = vld [vmem:[#allocation5 + $0x1144] ss:$48 sps:$4 sm:$0xff]   ;;  %v5427_v13 = vld [vmem:[#allocation5 + $0x114c] ss:$48 sps:$4 sm:$0xff]  }
  0x81   :  { %3641 = vmatprep.subr.bf16.mxu0 %v5262_v18  ;;  %3770 = vmatprep.subr.bf16.mxu1 %v5265_v19  ;;  %v5346_v18 = vld [vmem:[#allocation5 + $0xc64] ss:$48 sps:$4 sm:$0xff]   ;;  %v5349_v19 = vld [vmem:[#allocation5 + $0xc6c] ss:$48 sps:$4 sm:$0xff]  }
  0x84   :  { %3642 = vmatpush1.bf16.msra.mxu0 %v5260_v20  ;;  %3771 = vmatpush1.bf16.msra.mxu1 %v5263_v21  ;;  %v59_v20 = vld [vmem:[#allocation2 + $0x28] sm:$0xff]  ;;  %v5344_v21 = vld [vmem:[#allocation5 + $0xc60] ss:$48 sps:$4 sm:$0xff]  }
  0x85   :  { %3643 = vmatprep.subr.bf16.mxu0 %v5268_v22  ;;  %3772 = vmatprep.subr.bf16.mxu1 %v5271_v23  ;;  %v5347_v22 = vld [vmem:[#allocation5 + $0xc68] ss:$48 sps:$4 sm:$0xff]  }
  0x86   :  { %v65_v23 = vld [vmem:[#allocation2 + $0x58] sm:$0xff] }
  0x88   :  { %3644 = vmatpush1.bf16.msra.mxu0 %v5266_v24  ;;  %3773 = vmatpush1.bf16.msra.mxu1 %v5269_v25  ;;  %v5352_v24 = vld [vmem:[#allocation5 + $0xcc4] ss:$48 sps:$4 sm:$0xff]   ;;  %v6195_v25 = vpack.c.bf16 %v65_v23, %v59_v20  ;;  %v5431_v20 = vld [vmem:[#allocation5 + $0x11a8] ss:$48 sps:$4 sm:$0xff]  }
  0x89   :  { %3645 = vmatprep.subr.bf16.mxu0 %v5274_v26  ;;  %3774 = vmatprep.subr.bf16.mxu1 %v5277_v27  ;;  %v5355_v26 = vld [vmem:[#allocation5 + $0xccc] ss:$48 sps:$4 sm:$0xff]   ;;  %v5350_v27 = vld [vmem:[#allocation5 + $0xcc0] ss:$48 sps:$4 sm:$0xff]   ;;  %v5436_v23 = vld [vmem:[#allocation5 + $0x14] ss:$48 sps:$4 sm:$0xff]  }
  0x8c   :  { %3646 = vmatpush1.bf16.msra.mxu0 %v5272_v28  ;;  %3775 = vmatpush1.bf16.msra.mxu1 %v5275_v29  ;;  %v5353_v28 = vld [vmem:[#allocation5 + $0xcc8] ss:$48 sps:$4 sm:$0xff]   ;;  %v5358_v29 = vld [vmem:[#allocation5 + $0xd24] ss:$48 sps:$4 sm:$0xff]  }
  0x8d   :  { %3647 = vmatprep.subr.bf16.mxu0 %v5280_v30  ;;  %3776 = vmatprep.subr.bf16.mxu1 %v5283_v31  ;;  %v5361_v30 = vld [vmem:[#allocation5 + $0xd2c] ss:$48 sps:$4 sm:$0xff]   ;;  %v5356_v31 = vld [vmem:[#allocation5 + $0xd20] ss:$48 sps:$4 sm:$0xff]  }
  0x90   :  { %3648 = vmatpush1.bf16.msra.mxu0 %v5278_v34  ;;  %3777 = vmatpush1.bf16.msra.mxu1 %v5281_v35  ;;  %v5367_v34 = vld [vmem:[#allocation5 + $0xd8c] ss:$48 sps:$4 sm:$0xff]   ;;  %v5362_v35 = vld [vmem:[#allocation5 + $0xd80] ss:$48 sps:$4 sm:$0xff]  }
  0x91   :  { %3649 = vmatprep.subr.bf16.mxu0 %v5286_v37  ;;  %3778 = vmatprep.subr.bf16.mxu1 %v5289_v38  ;;  %v5365_v37 = vld [vmem:[#allocation5 + $0xd88] ss:$48 sps:$4 sm:$0xff]   ;;  %v5370_v38 = vld [vmem:[#allocation5 + $0xde4] ss:$48 sps:$4 sm:$0xff]  }
  0x94   :  { %3650 = vmatpush1.bf16.msra.mxu0 %v5284_v39  ;;  %3779 = vmatpush1.bf16.msra.mxu1 %v5287_v40  ;;  %v5373_v39 = vld [vmem:[#allocation5 + $0xdec] ss:$48 sps:$4 sm:$0xff]   ;;  %v5368_v40 = vld [vmem:[#allocation5 + $0xde0] ss:$48 sps:$4 sm:$0xff]  }
  0x95   :  { %3651 = vmatprep.subr.bf16.mxu0 %v5292_v41  ;;  %3780 = vmatprep.subr.bf16.mxu1 %v5295_v42  ;;  %v5371_v41 = vld [vmem:[#allocation5 + $0xde8] ss:$48 sps:$4 sm:$0xff]   ;;  %v5376_v42 = vld [vmem:[#allocation5 + $0xe44] ss:$48 sps:$4 sm:$0xff]  }
  0x98   :  { %3652 = vmatpush1.bf16.msra.mxu0 %v5290_v43  ;;  %3781 = vmatpush1.bf16.msra.mxu1 %v5293_v44  ;;  %v5379_v43 = vld [vmem:[#allocation5 + $0xe4c] ss:$48 sps:$4 sm:$0xff]   ;;  %v5374_v44 = vld [vmem:[#allocation5 + $0xe40] ss:$48 sps:$4 sm:$0xff]  }
  0x99   :  { %3653 = vmatprep.subr.bf16.mxu0 %v5298_v45  ;;  %3782 = vmatprep.subr.bf16.mxu1 %v5301_v46  ;;  %v5377_v45 = vld [vmem:[#allocation5 + $0xe48] ss:$48 sps:$4 sm:$0xff]   ;;  %v5382_v46 = vld [vmem:[#allocation5 + $0xea4] ss:$48 sps:$4 sm:$0xff]  }
  0x9c   :  { %3654 = vmatpush1.bf16.msra.mxu0 %v5296_v47  ;;  %3783 = vmatpush1.bf16.msra.mxu1 %v5299_v48  ;;  %v5385_v47 = vld [vmem:[#allocation5 + $0xeac] ss:$48 sps:$4 sm:$0xff]   ;;  %v5380_v48 = vld [vmem:[#allocation5 + $0xea0] ss:$48 sps:$4 sm:$0xff]  }
  0x9d   :  { %3655 = vmatprep.subr.bf16.mxu0 %v5304_v49  ;;  %3784 = vmatprep.subr.bf16.mxu1 %v5307_v51  ;;  %v5383_v49 = vld [vmem:[#allocation5 + $0xea8] ss:$48 sps:$4 sm:$0xff]   ;;  %v5388_v51 = vld [vmem:[#allocation5 + $0xf04] ss:$48 sps:$4 sm:$0xff]  }
  0xa0   :  { %3656 = vmatpush1.bf16.msra.mxu0 %v5302_v52  ;;  %3785 = vmatpush1.bf16.msra.mxu1 %v5305_v53  ;;  %v5391_v52 = vld [vmem:[#allocation5 + $0xf0c] ss:$48 sps:$4 sm:$0xff]   ;;  %v5386_v53 = vld [vmem:[#allocation5 + $0xf00] ss:$48 sps:$4 sm:$0xff]  }
  0xa1   :  { %3657 = vmatprep.subr.bf16.mxu0 %v5310_v54  ;;  %3786 = vmatprep.subr.bf16.mxu1 %v5313_v55  ;;  %v5389_v54 = vld [vmem:[#allocation5 + $0xf08] ss:$48 sps:$4 sm:$0xff]   ;;  %v5394_v55 = vld [vmem:[#allocation5 + $0xf64] ss:$48 sps:$4 sm:$0xff]  }
  0xa4   :  { %3658 = vmatpush1.bf16.msra.mxu0 %v5308_v56  ;;  %3787 = vmatpush1.bf16.msra.mxu1 %v5311_v57  ;;  %v5397_v56 = vld [vmem:[#allocation5 + $0xf6c] ss:$48 sps:$4 sm:$0xff]   ;;  %v5392_v57 = vld [vmem:[#allocation5 + $0xf60] ss:$48 sps:$4 sm:$0xff]  }
  0xa5   :  { %3659 = vmatprep.subr.bf16.mxu0 %v5316_v58  ;;  %3788 = vmatprep.subr.bf16.mxu1 %v5319_v59  ;;  %v5395_v58 = vld [vmem:[#allocation5 + $0xf68] ss:$48 sps:$4 sm:$0xff]   ;;  %v5400_v59 = vld [vmem:[#allocation5 + $0xfc4] ss:$48 sps:$4 sm:$0xff]  }
  0xa8   :  { %3660 = vmatpush1.bf16.msra.mxu0 %v5314_v60  ;;  %3789 = vmatpush1.bf16.msra.mxu1 %v5317_v61  ;;  %v5403_v60 = vld [vmem:[#allocation5 + $0xfcc] ss:$48 sps:$4 sm:$0xff]   ;;  %v5398_v61 = vld [vmem:[#allocation5 + $0xfc0] ss:$48 sps:$4 sm:$0xff]  }
  0xa9   :  { %3661 = vmatprep.subr.bf16.mxu0 %v5322_v62  ;;  %3790 = vmatprep.subr.bf16.mxu1 %v5325_v63  ;;  %v5401_v62 = vld [vmem:[#allocation5 + $0xfc8] ss:$48 sps:$4 sm:$0xff]   ;;  %v5406_v63 = vld [vmem:[#allocation5 + $0x1024] ss:$48 sps:$4 sm:$0xff]  }
  0xac   :  { %3662 = vmatpush1.bf16.msra.mxu0 %v5320_v0  ;;  %3791 = vmatpush1.bf16.msra.mxu1 %v5323_v1  ;;  %v5409_v0 = vld [vmem:[#allocation5 + $0x102c] ss:$48 sps:$4 sm:$0xff]   ;;  %v5404_v1 = vld [vmem:[#allocation5 + $0x1020] ss:$48 sps:$4 sm:$0xff]  }
  0xad   :  { %3663 = vmatprep.subr.bf16.mxu0 %v5328_v2  ;;  %3792 = vmatprep.subr.bf16.mxu1 %v5331_v3  ;;  %v5407_v2 = vld [vmem:[#allocation5 + $0x1028] ss:$48 sps:$4 sm:$0xff]   ;;  %v5412_v3 = vld [vmem:[#allocation5 + $0x1084] ss:$48 sps:$4 sm:$0xff]  }
  0xb0   :  { %3664 = vmatpush1.bf16.msra.mxu0 %v5326_v4  ;;  %3793 = vmatpush1.bf16.msra.mxu1 %v5329_v5  ;;  %v5415_v4 = vld [vmem:[#allocation5 + $0x108c] ss:$48 sps:$4 sm:$0xff]   ;;  %v5410_v5 = vld [vmem:[#allocation5 + $0x1080] ss:$48 sps:$4 sm:$0xff]  }
  0xb1   :  { %3665 = vmatprep.subr.bf16.mxu0 %v5334_v6  ;;  %3794 = vmatprep.subr.bf16.mxu1 %v5337_v7  ;;  %v5413_v6 = vld [vmem:[#allocation5 + $0x1088] ss:$48 sps:$4 sm:$0xff]   ;;  %v5418_v7 = vld [vmem:[#allocation5 + $0x10e4] ss:$48 sps:$4 sm:$0xff]  }
  0xb4   :  { %3666 = vmatpush1.bf16.msra.mxu0 %v5332_v8  ;;  %3795 = vmatpush1.bf16.msra.mxu1 %v5335_v10  ;;  %v5421_v8 = vld [vmem:[#allocation5 + $0x10ec] ss:$48 sps:$4 sm:$0xff]   ;;  %v5416_v10 = vld [vmem:[#allocation5 + $0x10e0] ss:$48 sps:$4 sm:$0xff]  }
  0xb5   :  { %3678 = vmatprep.subr.bf16.mxu0 %v5340_v11  ;;  %3807 = vmatprep.subr.bf16.mxu1 %v5343_v14  ;;  %v5419_v11 = vld [vmem:[#allocation5 + $0x10e8] ss:$48 sps:$4 sm:$0xff]   ;;  %v5422_v14 = vld [vmem:[#allocation5 + $0x1140] ss:$48 sps:$4 sm:$0xff]  }
  0xb7   :  { %3668 = vmatmul.mubr.bf16.vlgmr.msra.gmra.mrb[0].mxu0 %v6191_v17  ;;  %3797 = vmatmul.mubr.bf16.vlgmr.msra.gmra.mrb[0].mxu1 %v6191_v17 }
  0xb8   :  { %3679 = vmatpush1.bf16.msra.mxu0 %v5338_v15  ;;  %3808 = vmatpush1.bf16.msra.mxu1 %v5341_v16  ;;  %v5425_v15 = vld [vmem:[#allocation5 + $0x1148] ss:$48 sps:$4 sm:$0xff]   ;;  %v5430_v16 = vld [vmem:[#allocation5 + $0x11a4] ss:$48 sps:$4 sm:$0xff]  }
  0xb9   :  { %3680 = vmatprep.subr.bf16.mxu0 %v5346_v18  ;;  %3809 = vmatprep.subr.bf16.mxu1 %v5349_v19  ;;  %v5433_v18 = vld [vmem:[#allocation5 + $0x11ac] ss:$48 sps:$4 sm:$0xff]   ;;  %v5428_v19 = vld [vmem:[#allocation5 + $0x11a0] ss:$48 sps:$4 sm:$0xff]  }
  0xba   :  { %3710 = vmatprep.mubr.bf16.mxu0 %v6195_v25  ;;  %3839 = vmatprep.mubr.bf16.mxu1 %v6195_v25 }
  0xbc   :  { %3681 = vmatpush1.bf16.msra.mxu0 %v5344_v21  ;;  %3810 = vmatpush1.bf16.msra.mxu1 %v5347_v22  ;;  %v58_v21 = vld [vmem:[#allocation2 + $0x20] sm:$0xff]  ;;  %v64_v22 = vld [vmem:[#allocation2 + $0x50] sm:$0xff] }
  0xbd   :  { %3682 = vmatprep.subr.bf16.mxu0 %v5352_v24  ;;  %3811 = vmatprep.subr.bf16.mxu1 %v5355_v26  ;;  %v5439_v24 = vld [vmem:[#allocation5 + $0x1c] ss:$48 sps:$4 sm:$0xff]   ;;  %v6199_v26 = vpack.c.bf16 %v64_v22, %v58_v21  ;;  %v5520_v21 = vld [vmem:[#allocation5 + $0x554] ss:$48 sps:$4 sm:$0xff]  }
  0xbe   :  { %v5523_v22 = vld [vmem:[#allocation5 + $0x55c] ss:$48 sps:$4 sm:$0xff]  }
  0xc0   :  { %3683 = vmatpush1.bf16.msra.mxu0 %v5350_v27  ;;  %3812 = vmatpush1.bf16.msra.mxu1 %v5353_v28  ;;  %v5434_v27 = vld [vmem:[#allocation5 + $0x10] ss:$48 sps:$4 sm:$0xff]   ;;  %v5437_v28 = vld [vmem:[#allocation5 + $0x18] ss:$48 sps:$4 sm:$0xff]  }
  0xc1   :  { %3684 = vmatprep.subr.bf16.mxu0 %v5358_v29  ;;  %3813 = vmatprep.subr.bf16.mxu1 %v5361_v30  ;;  %v5442_v29 = vld [vmem:[#allocation5 + $0x74] ss:$48 sps:$4 sm:$0xff]   ;;  %v5445_v30 = vld [vmem:[#allocation5 + $0x7c] ss:$48 sps:$4 sm:$0xff]  }
  0xc4   :  { %3685 = vmatpush1.bf16.msra.mxu0 %v5356_v31  ;;  %3814 = vmatpush1.bf16.msra.mxu1 %v5359_v32  ;;  %v5440_v31 = vld [vmem:[#allocation5 + $0x70] ss:$48 sps:$4 sm:$0xff]   ;;  %v5443_v32 = vld [vmem:[#allocation5 + $0x78] ss:$48 sps:$4 sm:$0xff]  }
  0xc5   :  { %3686 = vmatprep.subr.bf16.mxu0 %v5364_v33  ;;  %3815 = vmatprep.subr.bf16.mxu1 %v5367_v34  ;;  %v5448_v33 = vld [vmem:[#allocation5 + $0xd4] ss:$48 sps:$4 sm:$0xff]   ;;  %v5451_v34 = vld [vmem:[#allocation5 + $0xdc] ss:$48 sps:$4 sm:$0xff]  }
  0xc8   :  { %3687 = vmatpush1.bf16.msra.mxu0 %v5362_v35  ;;  %3816 = vmatpush1.bf16.msra.mxu1 %v5365_v37  ;;  %v5446_v35 = vld [vmem:[#allocation5 + $0xd0] ss:$48 sps:$4 sm:$0xff]   ;;  %v5449_v37 = vld [vmem:[#allocation5 + $0xd8] ss:$48 sps:$4 sm:$0xff]  }
  0xc9   :  { %3688 = vmatprep.subr.bf16.mxu0 %v5370_v38  ;;  %3817 = vmatprep.subr.bf16.mxu1 %v5373_v39  ;;  %v5454_v38 = vld [vmem:[#allocation5 + $0x134] ss:$48 sps:$4 sm:$0xff]   ;;  %v5457_v39 = vld [vmem:[#allocation5 + $0x13c] ss:$48 sps:$4 sm:$0xff]  }
  0xcc   :  { %3689 = vmatpush1.bf16.msra.mxu0 %v5368_v40  ;;  %3818 = vmatpush1.bf16.msra.mxu1 %v5371_v41  ;;  %v5452_v40 = vld [vmem:[#allocation5 + $0x130] ss:$48 sps:$4 sm:$0xff]   ;;  %v5455_v41 = vld [vmem:[#allocation5 + $0x138] ss:$48 sps:$4 sm:$0xff]  }
  0xcd   :  { %3690 = vmatprep.subr.bf16.mxu0 %v5376_v42  ;;  %3819 = vmatprep.subr.bf16.mxu1 %v5379_v43  ;;  %v5460_v42 = vld [vmem:[#allocation5 + $0x194] ss:$48 sps:$4 sm:$0xff]   ;;  %v5463_v43 = vld [vmem:[#allocation5 + $0x19c] ss:$48 sps:$4 sm:$0xff]  }
  0xd0   :  { %3691 = vmatpush1.bf16.msra.mxu0 %v5374_v44  ;;  %3820 = vmatpush1.bf16.msra.mxu1 %v5377_v45  ;;  %v5458_v44 = vld [vmem:[#allocation5 + $0x190] ss:$48 sps:$4 sm:$0xff]   ;;  %v5461_v45 = vld [vmem:[#allocation5 + $0x198] ss:$48 sps:$4 sm:$0xff]  }
  0xd1   :  { %3692 = vmatprep.subr.bf16.mxu0 %v5382_v46  ;;  %3821 = vmatprep.subr.bf16.mxu1 %v5385_v47  ;;  %v5466_v46 = vld [vmem:[#allocation5 + $0x1f4] ss:$48 sps:$4 sm:$0xff]   ;;  %v5469_v47 = vld [vmem:[#allocation5 + $0x1fc] ss:$48 sps:$4 sm:$0xff]  }
  0xd4   :  { %3693 = vmatpush1.bf16.msra.mxu0 %v5380_v48  ;;  %3822 = vmatpush1.bf16.msra.mxu1 %v5383_v49  ;;  %v5464_v48 = vld [vmem:[#allocation5 + $0x1f0] ss:$48 sps:$4 sm:$0xff]   ;;  %v5467_v49 = vld [vmem:[#allocation5 + $0x1f8] ss:$48 sps:$4 sm:$0xff]  }
  0xd5   :  { %3694 = vmatprep.subr.bf16.mxu0 %v5388_v51  ;;  %3823 = vmatprep.subr.bf16.mxu1 %v5391_v52  ;;  %v5472_v51 = vld [vmem:[#allocation5 + $0x254] ss:$48 sps:$4 sm:$0xff]   ;;  %v5475_v52 = vld [vmem:[#allocation5 + $0x25c] ss:$48 sps:$4 sm:$0xff]  }
  0xd8   :  { %3695 = vmatpush1.bf16.msra.mxu0 %v5386_v53  ;;  %3824 = vmatpush1.bf16.msra.mxu1 %v5389_v54  ;;  %v5470_v53 = vld [vmem:[#allocation5 + $0x250] ss:$48 sps:$4 sm:$0xff]   ;;  %v5473_v54 = vld [vmem:[#allocation5 + $0x258] ss:$48 sps:$4 sm:$0xff]  }
  0xd9   :  { %3696 = vmatprep.subr.bf16.mxu0 %v5394_v55  ;;  %3825 = vmatprep.subr.bf16.mxu1 %v5397_v56  ;;  %v5478_v55 = vld [vmem:[#allocation5 + $0x2b4] ss:$48 sps:$4 sm:$0xff]   ;;  %v5481_v56 = vld [vmem:[#allocation5 + $0x2bc] ss:$48 sps:$4 sm:$0xff]  }
  0xdc   :  { %3697 = vmatpush1.bf16.msra.mxu0 %v5392_v57  ;;  %3826 = vmatpush1.bf16.msra.mxu1 %v5395_v58  ;;  %v5476_v57 = vld [vmem:[#allocation5 + $0x2b0] ss:$48 sps:$4 sm:$0xff]   ;;  %v5479_v58 = vld [vmem:[#allocation5 + $0x2b8] ss:$48 sps:$4 sm:$0xff]  }
  0xdd   :  { %3698 = vmatprep.subr.bf16.mxu0 %v5400_v59  ;;  %3827 = vmatprep.subr.bf16.mxu1 %v5403_v60  ;;  %v5484_v59 = vld [vmem:[#allocation5 + $0x314] ss:$48 sps:$4 sm:$0xff]   ;;  %v5487_v60 = vld [vmem:[#allocation5 + $0x31c] ss:$48 sps:$4 sm:$0xff]  }
  0xe0   :  { %3699 = vmatpush1.bf16.msra.mxu0 %v5398_v61  ;;  %3828 = vmatpush1.bf16.msra.mxu1 %v5401_v62  ;;  %v5482_v61 = vld [vmem:[#allocation5 + $0x310] ss:$48 sps:$4 sm:$0xff]   ;;  %v5485_v62 = vld [vmem:[#allocation5 + $0x318] ss:$48 sps:$4 sm:$0xff]  }
  0xe1   :  { %3700 = vmatprep.subr.bf16.mxu0 %v5406_v63  ;;  %3829 = vmatprep.subr.bf16.mxu1 %v5409_v0  ;;  %v5490_v63 = vld [vmem:[#allocation5 + $0x374] ss:$48 sps:$4 sm:$0xff]   ;;  %v5493_v0 = vld [vmem:[#allocation5 + $0x37c] ss:$48 sps:$4 sm:$0xff]  }
  0xe4   :  { %3701 = vmatpush1.bf16.msra.mxu0 %v5404_v1  ;;  %3830 = vmatpush1.bf16.msra.mxu1 %v5407_v2  ;;  %v5488_v1 = vld [vmem:[#allocation5 + $0x370] ss:$48 sps:$4 sm:$0xff]   ;;  %v5491_v2 = vld [vmem:[#allocation5 + $0x378] ss:$48 sps:$4 sm:$0xff]  }
  0xe5   :  { %3702 = vmatprep.subr.bf16.mxu0 %v5412_v3  ;;  %3831 = vmatprep.subr.bf16.mxu1 %v5415_v4  ;;  %v5496_v3 = vld [vmem:[#allocation5 + $0x3d4] ss:$48 sps:$4 sm:$0xff]   ;;  %v5499_v4 = vld [vmem:[#allocation5 + $0x3dc] ss:$48 sps:$4 sm:$0xff]  }
  0xe8   :  { %3703 = vmatpush1.bf16.msra.mxu0 %v5410_v5  ;;  %3832 = vmatpush1.bf16.msra.mxu1 %v5413_v6  ;;  %v5494_v5 = vld [vmem:[#allocation5 + $0x3d0] ss:$48 sps:$4 sm:$0xff]   ;;  %v5497_v6 = vld [vmem:[#allocation5 + $0x3d8] ss:$48 sps:$4 sm:$0xff]  }
  0xe9   :  { %3704 = vmatprep.subr.bf16.mxu0 %v5418_v7  ;;  %3833 = vmatprep.subr.bf16.mxu1 %v5421_v8  ;;  %v5502_v7 = vld [vmem:[#allocation5 + $0x434] ss:$48 sps:$4 sm:$0xff]   ;;  %v5505_v8 = vld [vmem:[#allocation5 + $0x43c] ss:$48 sps:$4 sm:$0xff]  }
  0xec   :  { %3705 = vmatpush1.bf16.msra.mxu0 %v5416_v10  ;;  %3834 = vmatpush1.bf16.msra.mxu1 %v5419_v11  ;;  %v5500_v10 = vld [vmem:[#allocation5 + $0x430] ss:$48 sps:$4 sm:$0xff]   ;;  %v5503_v11 = vld [vmem:[#allocation5 + $0x438] ss:$48 sps:$4 sm:$0xff]  }
  0xed   :  { %3706 = vmatprep.subr.bf16.mxu0 %v5424_v12  ;;  %3835 = vmatprep.subr.bf16.mxu1 %v5427_v13  ;;  %v5508_v12 = vld [vmem:[#allocation5 + $0x494] ss:$48 sps:$4 sm:$0xff]   ;;  %v5511_v13 = vld [vmem:[#allocation5 + $0x49c] ss:$48 sps:$4 sm:$0xff]  }
  0xf0   :  { %3707 = vmatpush1.bf16.msra.mxu0 %v5422_v14  ;;  %3836 = vmatpush1.bf16.msra.mxu1 %v5425_v15  ;;  %v5506_v14 = vld [vmem:[#allocation5 + $0x490] ss:$48 sps:$4 sm:$0xff]   ;;  %v5509_v15 = vld [vmem:[#allocation5 + $0x498] ss:$48 sps:$4 sm:$0xff]  }
  0xf1   :  { %3708 = vmatprep.subr.bf16.mxu0 %v5430_v16  ;;  %3837 = vmatprep.subr.bf16.mxu1 %v5433_v18  ;;  %v5514_v16 = vld [vmem:[#allocation5 + $0x4f4] ss:$48 sps:$4 sm:$0xff]   ;;  %v5517_v18 = vld [vmem:[#allocation5 + $0x4fc] ss:$48 sps:$4 sm:$0xff]  }
  0xf4   :  { %3709 = vmatpush1.bf16.msra.mxu0 %v5428_v19  ;;  %3838 = vmatpush1.bf16.msra.mxu1 %v5431_v20  ;;  %v5512_v19 = vld [vmem:[#allocation5 + $0x4f0] ss:$48 sps:$4 sm:$0xff]   ;;  %v5515_v20 = vld [vmem:[#allocation5 + $0x4f8] ss:$48 sps:$4 sm:$0xff]  }
  0xf5   :  { %3850 = vmatprep.subr.bf16.mxu0 %v5436_v23  ;;  %3979 = vmatprep.subr.bf16.mxu1 %v5439_v24  ;;  %v5518_v23 = vld [vmem:[#allocation5 + $0x550] ss:$48 sps:$4 sm:$0xff]   ;;  %v5521_v24 = vld [vmem:[#allocation5 + $0x558] ss:$48 sps:$4 sm:$0xff]  }
  0xf7   :  { %3711 = vmatmul.mubr.bf16.vlgmr.msra.gmra.mrb[0].mxu0 %v6199_v26  ;;  %3840 = vmatmul.mubr.bf16.vlgmr.msra.gmra.mrb[0].mxu1 %v6199_v26 }
  0xf8   :  { %3851 = vmatpush1.bf16.msra.mxu0 %v5434_v27  ;;  %3980 = vmatpush1.bf16.msra.mxu1 %v5437_v28  ;;  %v5526_v27 = vld [vmem:[#allocation5 + $0x5b4] ss:$48 sps:$4 sm:$0xff]   ;;  %v5529_v28 = vld [vmem:[#allocation5 + $0x5bc] ss:$48 sps:$4 sm:$0xff]  }
  0xf9   :  { %3852 = vmatprep.subr.bf16.mxu0 %v5442_v29  ;;  %3981 = vmatprep.subr.bf16.mxu1 %v5445_v30  ;;  %v5524_v29 = vld [vmem:[#allocation5 + $0x5b0] ss:$48 sps:$4 sm:$0xff]   ;;  %v5527_v30 = vld [vmem:[#allocation5 + $0x5b8] ss:$48 sps:$4 sm:$0xff]  }
  0xfa   :  { %3882 = vmatprep.mubr.bf16.mxu0 %v6179_v50  ;;  %4011 = vmatprep.mubr.bf16.mxu1 %v6179_v50 }
  0xfc   :  { %3853 = vmatpush1.bf16.msra.mxu0 %v5440_v31  ;;  %3982 = vmatpush1.bf16.msra.mxu1 %v5443_v32  ;;  %v5532_v31 = vld [vmem:[#allocation5 + $0x614] ss:$48 sps:$4 sm:$0xff]   ;;  %v5535_v32 = vld [vmem:[#allocation5 + $0x61c] ss:$48 sps:$4 sm:$0xff]  }
  0xfd   :  { %3854 = vmatprep.subr.bf16.mxu0 %v5448_v33  ;;  %3983 = vmatprep.subr.bf16.mxu1 %v5451_v34  ;;  %v5530_v33 = vld [vmem:[#allocation5 + $0x610] ss:$48 sps:$4 sm:$0xff]   ;;  %v5533_v34 = vld [vmem:[#allocation5 + $0x618] ss:$48 sps:$4 sm:$0xff]  }
 0x100   :  { %3855 = vmatpush1.bf16.msra.mxu0 %v5446_v35  ;;  %3984 = vmatpush1.bf16.msra.mxu1 %v5449_v37  ;;  %v5538_v35 = vld [vmem:[#allocation5 + $0x674] ss:$48 sps:$4 sm:$0xff]   ;;  %v5541_v37 = vld [vmem:[#allocation5 + $0x67c] ss:$48 sps:$4 sm:$0xff]  }
 0x101   :  { %3856 = vmatprep.subr.bf16.mxu0 %v5454_v38  ;;  %3985 = vmatprep.subr.bf16.mxu1 %v5457_v39  ;;  %v5536_v38 = vld [vmem:[#allocation5 + $0x670] ss:$48 sps:$4 sm:$0xff]   ;;  %v5539_v39 = vld [vmem:[#allocation5 + $0x678] ss:$48 sps:$4 sm:$0xff]  }
 0x104   :  { %3857 = vmatpush1.bf16.msra.mxu0 %v5452_v40  ;;  %3986 = vmatpush1.bf16.msra.mxu1 %v5455_v41  ;;  %v5544_v40 = vld [vmem:[#allocation5 + $0x6d4] ss:$48 sps:$4 sm:$0xff]   ;;  %v5547_v41 = vld [vmem:[#allocation5 + $0x6dc] ss:$48 sps:$4 sm:$0xff]  }
 0x105   :  { %3858 = vmatprep.subr.bf16.mxu0 %v5460_v42  ;;  %3987 = vmatprep.subr.bf16.mxu1 %v5463_v43  ;;  %v5542_v42 = vld [vmem:[#allocation5 + $0x6d0] ss:$48 sps:$4 sm:$0xff]   ;;  %v5545_v43 = vld [vmem:[#allocation5 + $0x6d8] ss:$48 sps:$4 sm:$0xff]  }
 0x108   :  { %3859 = vmatpush1.bf16.msra.mxu0 %v5458_v44  ;;  %3988 = vmatpush1.bf16.msra.mxu1 %v5461_v45  ;;  %v5550_v44 = vld [vmem:[#allocation5 + $0x734] ss:$48 sps:$4 sm:$0xff]   ;;  %v5553_v45 = vld [vmem:[#allocation5 + $0x73c] ss:$48 sps:$4 sm:$0xff]  }
 0x109   :  { %3860 = vmatprep.subr.bf16.mxu0 %v5466_v46  ;;  %3989 = vmatprep.subr.bf16.mxu1 %v5469_v47  ;;  %v5548_v46 = vld [vmem:[#allocation5 + $0x730] ss:$48 sps:$4 sm:$0xff]   ;;  %v5551_v47 = vld [vmem:[#allocation5 + $0x738] ss:$48 sps:$4 sm:$0xff]  }
 0x10c   :  { %3861 = vmatpush1.bf16.msra.mxu0 %v5464_v48  ;;  %3990 = vmatpush1.bf16.msra.mxu1 %v5467_v49  ;;  %v5556_v48 = vld [vmem:[#allocation5 + $0x794] ss:$48 sps:$4 sm:$0xff]   ;;  %v5559_v49 = vld [vmem:[#allocation5 + $0x79c] ss:$48 sps:$4 sm:$0xff]  }
 0x10d   :  { %3862 = vmatprep.subr.bf16.mxu0 %v5472_v51  ;;  %3991 = vmatprep.subr.bf16.mxu1 %v5475_v52  ;;  %v5554_v51 = vld [vmem:[#allocation5 + $0x790] ss:$48 sps:$4 sm:$0xff]   ;;  %v5557_v52 = vld [vmem:[#allocation5 + $0x798] ss:$48 sps:$4 sm:$0xff]  }
 0x110   :  { %3863 = vmatpush1.bf16.msra.mxu0 %v5470_v53  ;;  %3992 = vmatpush1.bf16.msra.mxu1 %v5473_v54  ;;  %v5562_v53 = vld [vmem:[#allocation5 + $0x7f4] ss:$48 sps:$4 sm:$0xff]   ;;  %v5565_v54 = vld [vmem:[#allocation5 + $0x7fc] ss:$48 sps:$4 sm:$0xff]  }
 0x111   :  { %3864 = vmatprep.subr.bf16.mxu0 %v5478_v55  ;;  %3993 = vmatprep.subr.bf16.mxu1 %v5481_v56  ;;  %v5560_v55 = vld [vmem:[#allocation5 + $0x7f0] ss:$48 sps:$4 sm:$0xff]   ;;  %v5563_v56 = vld [vmem:[#allocation5 + $0x7f8] ss:$48 sps:$4 sm:$0xff]  }
 0x114   :  { %3865 = vmatpush1.bf16.msra.mxu0 %v5476_v57  ;;  %3994 = vmatpush1.bf16.msra.mxu1 %v5479_v58  ;;  %v5568_v57 = vld [vmem:[#allocation5 + $0x854] ss:$48 sps:$4 sm:$0xff]   ;;  %v5571_v58 = vld [vmem:[#allocation5 + $0x85c] ss:$48 sps:$4 sm:$0xff]  }
 0x115   :  { %3866 = vmatprep.subr.bf16.mxu0 %v5484_v59  ;;  %3995 = vmatprep.subr.bf16.mxu1 %v5487_v60  ;;  %v5566_v59 = vld [vmem:[#allocation5 + $0x850] ss:$48 sps:$4 sm:$0xff]   ;;  %v5569_v60 = vld [vmem:[#allocation5 + $0x858] ss:$48 sps:$4 sm:$0xff]  }
 0x118   :  { %3867 = vmatpush1.bf16.msra.mxu0 %v5482_v61  ;;  %3996 = vmatpush1.bf16.msra.mxu1 %v5485_v62  ;;  %v5574_v61 = vld [vmem:[#allocation5 + $0x8b4] ss:$48 sps:$4 sm:$0xff]   ;;  %v5577_v62 = vld [vmem:[#allocation5 + $0x8bc] ss:$48 sps:$4 sm:$0xff]  }
 0x119   :  { %3868 = vmatprep.subr.bf16.mxu0 %v5490_v63  ;;  %3997 = vmatprep.subr.bf16.mxu1 %v5493_v0  ;;  %v5572_v63 = vld [vmem:[#allocation5 + $0x8b0] ss:$48 sps:$4 sm:$0xff]   ;;  %v5575_v0 = vld [vmem:[#allocation5 + $0x8b8] ss:$48 sps:$4 sm:$0xff]  }
 0x11c   :  { %3869 = vmatpush1.bf16.msra.mxu0 %v5488_v1  ;;  %3998 = vmatpush1.bf16.msra.mxu1 %v5491_v2  ;;  %v5580_v1 = vld [vmem:[#allocation5 + $0x914] ss:$48 sps:$4 sm:$0xff]   ;;  %v5583_v2 = vld [vmem:[#allocation5 + $0x91c] ss:$48 sps:$4 sm:$0xff]  }
 0x11d   :  { %3870 = vmatprep.subr.bf16.mxu0 %v5496_v3  ;;  %3999 = vmatprep.subr.bf16.mxu1 %v5499_v4  ;;  %v5578_v3 = vld [vmem:[#allocation5 + $0x910] ss:$48 sps:$4 sm:$0xff]   ;;  %v5581_v4 = vld [vmem:[#allocation5 + $0x918] ss:$48 sps:$4 sm:$0xff]  }
 0x120   :  { %3871 = vmatpush1.bf16.msra.mxu0 %v5494_v5  ;;  %4000 = vmatpush1.bf16.msra.mxu1 %v5497_v6  ;;  %v5586_v5 = vld [vmem:[#allocation5 + $0x974] ss:$48 sps:$4 sm:$0xff]   ;;  %v5589_v6 = vld [vmem:[#allocation5 + $0x97c] ss:$48 sps:$4 sm:$0xff]  }
 0x121   :  { %3872 = vmatprep.subr.bf16.mxu0 %v5502_v7  ;;  %4001 = vmatprep.subr.bf16.mxu1 %v5505_v8  ;;  %v5584_v7 = vld [vmem:[#allocation5 + $0x970] ss:$48 sps:$4 sm:$0xff]   ;;  %v5587_v8 = vld [vmem:[#allocation5 + $0x978] ss:$48 sps:$4 sm:$0xff]  }
 0x124   :  { %3873 = vmatpush1.bf16.msra.mxu0 %v5500_v10  ;;  %4002 = vmatpush1.bf16.msra.mxu1 %v5503_v11  ;;  %v5592_v10 = vld [vmem:[#allocation5 + $0x9d4] ss:$48 sps:$4 sm:$0xff]   ;;  %v5595_v11 = vld [vmem:[#allocation5 + $0x9dc] ss:$48 sps:$4 sm:$0xff]  }
 0x125   :  { %3874 = vmatprep.subr.bf16.mxu0 %v5508_v12  ;;  %4003 = vmatprep.subr.bf16.mxu1 %v5511_v13  ;;  %v5590_v12 = vld [vmem:[#allocation5 + $0x9d0] ss:$48 sps:$4 sm:$0xff]   ;;  %v5593_v13 = vld [vmem:[#allocation5 + $0x9d8] ss:$48 sps:$4 sm:$0xff]  }
 0x128   :  { %3875 = vmatpush1.bf16.msra.mxu0 %v5506_v14  ;;  %4004 = vmatpush1.bf16.msra.mxu1 %v5509_v15  ;;  %v5598_v14 = vld [vmem:[#allocation5 + $0xa34] ss:$48 sps:$4 sm:$0xff]   ;;  %v5601_v15 = vld [vmem:[#allocation5 + $0xa3c] ss:$48 sps:$4 sm:$0xff]  }
 0x129   :  { %3876 = vmatprep.subr.bf16.mxu0 %v5514_v16  ;;  %4005 = vmatprep.subr.bf16.mxu1 %v5517_v18  ;;  %v5596_v16 = vld [vmem:[#allocation5 + $0xa30] ss:$48 sps:$4 sm:$0xff]   ;;  %v5599_v18 = vld [vmem:[#allocation5 + $0xa38] ss:$48 sps:$4 sm:$0xff]  }
 0x12c   :  { %3877 = vmatpush1.bf16.msra.mxu0 %v5512_v19  ;;  %4006 = vmatpush1.bf16.msra.mxu1 %v5515_v20  ;;  %v5604_v19 = vld [vmem:[#allocation5 + $0xa94] ss:$48 sps:$4 sm:$0xff]   ;;  %v5607_v20 = vld [vmem:[#allocation5 + $0xa9c] ss:$48 sps:$4 sm:$0xff]  }
 0x12d   :  { %3878 = vmatprep.subr.bf16.mxu0 %v5520_v21  ;;  %4007 = vmatprep.subr.bf16.mxu1 %v5523_v22  ;;  %v5602_v21 = vld [vmem:[#allocation5 + $0xa90] ss:$48 sps:$4 sm:$0xff]   ;;  %v5605_v22 = vld [vmem:[#allocation5 + $0xa98] ss:$48 sps:$4 sm:$0xff]  }
 0x130   :  { %3879 = vmatpush1.bf16.msra.mxu0 %v5518_v23  ;;  %4008 = vmatpush1.bf16.msra.mxu1 %v5521_v24  ;;  %v5610_v23 = vld [vmem:[#allocation5 + $0xaf4] ss:$48 sps:$4 sm:$0xff]   ;;  %v5613_v24 = vld [vmem:[#allocation5 + $0xafc] ss:$48 sps:$4 sm:$0xff]  }
 0x131   :  { %3880 = vmatprep.subr.bf16.mxu0 %v5526_v27  ;;  %4009 = vmatprep.subr.bf16.mxu1 %v5529_v28  ;;  %v5608_v27 = vld [vmem:[#allocation5 + $0xaf0] ss:$48 sps:$4 sm:$0xff]   ;;  %v5611_v28 = vld [vmem:[#allocation5 + $0xaf8] ss:$48 sps:$4 sm:$0xff]  }
 0x134   :  { %3881 = vmatpush1.bf16.msra.mxu0 %v5524_v29  ;;  %4010 = vmatpush1.bf16.msra.mxu1 %v5527_v30  ;;  %v5616_v29 = vld [vmem:[#allocation5 + $0xb54] ss:$48 sps:$4 sm:$0xff]   ;;  %v5619_v30 = vld [vmem:[#allocation5 + $0xb5c] ss:$48 sps:$4 sm:$0xff]  }
 0x135   :  { %3893 = vmatprep.subr.bf16.mxu0 %v5532_v31  ;;  %4022 = vmatprep.subr.bf16.mxu1 %v5535_v32  ;;  %v5614_v31 = vld [vmem:[#allocation5 + $0xb50] ss:$48 sps:$4 sm:$0xff]   ;;  %v5617_v32 = vld [vmem:[#allocation5 + $0xb58] ss:$48 sps:$4 sm:$0xff]  }
 0x137   :  { %3883 = vmatmul.mubr.bf16.vlgmr.msra.gmra.mrb[4].mxu0 %v6183_v9  ;;  %4012 = vmatmul.mubr.bf16.vlgmr.msra.gmra.mrb[4].mxu1 %v6183_v9 }
 0x138   :  { %3894 = vmatpush1.bf16.msra.mxu0 %v5530_v33  ;;  %4023 = vmatpush1.bf16.msra.mxu1 %v5533_v34  ;;  %v5622_v33 = vld [vmem:[#allocation5 + $0xbb4] ss:$48 sps:$4 sm:$0xff]   ;;  %v5625_v34 = vld [vmem:[#allocation5 + $0xbbc] ss:$48 sps:$4 sm:$0xff]  }
 0x139   :  { %3895 = vmatprep.subr.bf16.mxu0 %v5538_v35  ;;  %4024 = vmatprep.subr.bf16.mxu1 %v5541_v37  ;;  %v5620_v35 = vld [vmem:[#allocation5 + $0xbb0] ss:$48 sps:$4 sm:$0xff]   ;;  %v5623_v37 = vld [vmem:[#allocation5 + $0xbb8] ss:$48 sps:$4 sm:$0xff]  }
 0x13a   :  { %3925 = vmatprep.mubr.bf16.mxu0 %v6187_v36  ;;  %4054 = vmatprep.mubr.bf16.mxu1 %v6187_v36 }
 0x13c   :  { %3896 = vmatpush1.bf16.msra.mxu0 %v5536_v38  ;;  %4025 = vmatpush1.bf16.msra.mxu1 %v5539_v39  ;;  %v5628_v38 = vld [vmem:[#allocation5 + $0xc14] ss:$48 sps:$4 sm:$0xff]   ;;  %v5631_v39 = vld [vmem:[#allocation5 + $0xc1c] ss:$48 sps:$4 sm:$0xff]  }
 0x13d   :  { %3897 = vmatprep.subr.bf16.mxu0 %v5544_v40  ;;  %4026 = vmatprep.subr.bf16.mxu1 %v5547_v41  ;;  %v5626_v40 = vld [vmem:[#allocation5 + $0xc10] ss:$48 sps:$4 sm:$0xff]   ;;  %v5629_v41 = vld [vmem:[#allocation5 + $0xc18] ss:$48 sps:$4 sm:$0xff]  }
 0x140   :  { %3898 = vmatpush1.bf16.msra.mxu0 %v5542_v42  ;;  %4027 = vmatpush1.bf16.msra.mxu1 %v5545_v43  ;;  %v5634_v42 = vld [vmem:[#allocation5 + $0xc74] ss:$48 sps:$4 sm:$0xff]   ;;  %v5637_v43 = vld [vmem:[#allocation5 + $0xc7c] ss:$48 sps:$4 sm:$0xff]  }
 0x141   :  { %3899 = vmatprep.subr.bf16.mxu0 %v5550_v44  ;;  %4028 = vmatprep.subr.bf16.mxu1 %v5553_v45  ;;  %v5632_v44 = vld [vmem:[#allocation5 + $0xc70] ss:$48 sps:$4 sm:$0xff]   ;;  %v5635_v45 = vld [vmem:[#allocation5 + $0xc78] ss:$48 sps:$4 sm:$0xff]  }
 0x144   :  { %3900 = vmatpush1.bf16.msra.mxu0 %v5548_v46  ;;  %4029 = vmatpush1.bf16.msra.mxu1 %v5551_v47  ;;  %v5640_v46 = vld [vmem:[#allocation5 + $0xcd4] ss:$48 sps:$4 sm:$0xff]   ;;  %v5643_v47 = vld [vmem:[#allocation5 + $0xcdc] ss:$48 sps:$4 sm:$0xff]  }
 0x145   :  { %3901 = vmatprep.subr.bf16.mxu0 %v5556_v48  ;;  %4030 = vmatprep.subr.bf16.mxu1 %v5559_v49  ;;  %v5638_v48 = vld [vmem:[#allocation5 + $0xcd0] ss:$48 sps:$4 sm:$0xff]   ;;  %v5641_v49 = vld [vmem:[#allocation5 + $0xcd8] ss:$48 sps:$4 sm:$0xff]  }
 0x148   :  { %3902 = vmatpush1.bf16.msra.mxu0 %v5554_v51  ;;  %4031 = vmatpush1.bf16.msra.mxu1 %v5557_v52  ;;  %v5646_v51 = vld [vmem:[#allocation5 + $0xd34] ss:$48 sps:$4 sm:$0xff]   ;;  %v5649_v52 = vld [vmem:[#allocation5 + $0xd3c] ss:$48 sps:$4 sm:$0xff]  }
 0x149   :  { %3903 = vmatprep.subr.bf16.mxu0 %v5562_v53  ;;  %4032 = vmatprep.subr.bf16.mxu1 %v5565_v54  ;;  %v5644_v53 = vld [vmem:[#allocation5 + $0xd30] ss:$48 sps:$4 sm:$0xff]   ;;  %v5647_v54 = vld [vmem:[#allocation5 + $0xd38] ss:$48 sps:$4 sm:$0xff]  }
 0x14c   :  { %3904 = vmatpush1.bf16.msra.mxu0 %v5560_v55  ;;  %4033 = vmatpush1.bf16.msra.mxu1 %v5563_v56  ;;  %v5652_v55 = vld [vmem:[#allocation5 + $0xd94] ss:$48 sps:$4 sm:$0xff]   ;;  %v5655_v56 = vld [vmem:[#allocation5 + $0xd9c] ss:$48 sps:$4 sm:$0xff]  }
 0x14d   :  { %3905 = vmatprep.subr.bf16.mxu0 %v5568_v57  ;;  %4034 = vmatprep.subr.bf16.mxu1 %v5571_v58  ;;  %v5650_v57 = vld [vmem:[#allocation5 + $0xd90] ss:$48 sps:$4 sm:$0xff]   ;;  %v5653_v58 = vld [vmem:[#allocation5 + $0xd98] ss:$48 sps:$4 sm:$0xff]  }
 0x150   :  { %3906 = vmatpush1.bf16.msra.mxu0 %v5566_v59  ;;  %4035 = vmatpush1.bf16.msra.mxu1 %v5569_v60  ;;  %v5658_v59 = vld [vmem:[#allocation5 + $0xdf4] ss:$48 sps:$4 sm:$0xff]   ;;  %v5661_v60 = vld [vmem:[#allocation5 + $0xdfc] ss:$48 sps:$4 sm:$0xff]  }
 0x151   :  { %3907 = vmatprep.subr.bf16.mxu0 %v5574_v61  ;;  %4036 = vmatprep.subr.bf16.mxu1 %v5577_v62  ;;  %v5656_v61 = vld [vmem:[#allocation5 + $0xdf0] ss:$48 sps:$4 sm:$0xff]   ;;  %v5659_v62 = vld [vmem:[#allocation5 + $0xdf8] ss:$48 sps:$4 sm:$0xff]  }
 0x154   :  { %3908 = vmatpush1.bf16.msra.mxu0 %v5572_v63  ;;  %4037 = vmatpush1.bf16.msra.mxu1 %v5575_v0  ;;  %v5664_v63 = vld [vmem:[#allocation5 + $0xe54] ss:$48 sps:$4 sm:$0xff]   ;;  %v5667_v0 = vld [vmem:[#allocation5 + $0xe5c] ss:$48 sps:$4 sm:$0xff]  }
 0x155   :  { %3909 = vmatprep.subr.bf16.mxu0 %v5580_v1  ;;  %4038 = vmatprep.subr.bf16.mxu1 %v5583_v2  ;;  %v5662_v1 = vld [vmem:[#allocation5 + $0xe50] ss:$48 sps:$4 sm:$0xff]   ;;  %v5665_v2 = vld [vmem:[#allocation5 + $0xe58] ss:$48 sps:$4 sm:$0xff]  }
 0x158   :  { %3910 = vmatpush1.bf16.msra.mxu0 %v5578_v3  ;;  %4039 = vmatpush1.bf16.msra.mxu1 %v5581_v4  ;;  %v5670_v3 = vld [vmem:[#allocation5 + $0xeb4] ss:$48 sps:$4 sm:$0xff]   ;;  %v5673_v4 = vld [vmem:[#allocation5 + $0xebc] ss:$48 sps:$4 sm:$0xff]  }
 0x159   :  { %3911 = vmatprep.subr.bf16.mxu0 %v5586_v5  ;;  %4040 = vmatprep.subr.bf16.mxu1 %v5589_v6  ;;  %v5668_v5 = vld [vmem:[#allocation5 + $0xeb0] ss:$48 sps:$4 sm:$0xff]   ;;  %v5671_v6 = vld [vmem:[#allocation5 + $0xeb8] ss:$48 sps:$4 sm:$0xff]  }
 0x15c   :  { %3912 = vmatpush1.bf16.msra.mxu0 %v5584_v7  ;;  %4041 = vmatpush1.bf16.msra.mxu1 %v5587_v8  ;;  %v5676_v7 = vld [vmem:[#allocation5 + $0xf14] ss:$48 sps:$4 sm:$0xff]   ;;  %v5679_v8 = vld [vmem:[#allocation5 + $0xf1c] ss:$48 sps:$4 sm:$0xff]  }
 0x15d   :  { %3913 = vmatprep.subr.bf16.mxu0 %v5592_v10  ;;  %4042 = vmatprep.subr.bf16.mxu1 %v5595_v11  ;;  %v5674_v10 = vld [vmem:[#allocation5 + $0xf10] ss:$48 sps:$4 sm:$0xff]   ;;  %v5677_v11 = vld [vmem:[#allocation5 + $0xf18] ss:$48 sps:$4 sm:$0xff]  }
 0x160   :  { %3914 = vmatpush1.bf16.msra.mxu0 %v5590_v12  ;;  %4043 = vmatpush1.bf16.msra.mxu1 %v5593_v13  ;;  %v5682_v12 = vld [vmem:[#allocation5 + $0xf74] ss:$48 sps:$4 sm:$0xff]   ;;  %v5685_v13 = vld [vmem:[#allocation5 + $0xf7c] ss:$48 sps:$4 sm:$0xff]  }
 0x161   :  { %3915 = vmatprep.subr.bf16.mxu0 %v5598_v14  ;;  %4044 = vmatprep.subr.bf16.mxu1 %v5601_v15  ;;  %v5680_v14 = vld [vmem:[#allocation5 + $0xf70] ss:$48 sps:$4 sm:$0xff]   ;;  %v5683_v15 = vld [vmem:[#allocation5 + $0xf78] ss:$48 sps:$4 sm:$0xff]  }
 0x164   :  { %3916 = vmatpush1.bf16.msra.mxu0 %v5596_v16  ;;  %4045 = vmatpush1.bf16.msra.mxu1 %v5599_v18  ;;  %v5688_v16 = vld [vmem:[#allocation5 + $0xfd4] ss:$48 sps:$4 sm:$0xff]   ;;  %v5691_v18 = vld [vmem:[#allocation5 + $0xfdc] ss:$48 sps:$4 sm:$0xff]  }
 0x165   :  { %3917 = vmatprep.subr.bf16.mxu0 %v5604_v19  ;;  %4046 = vmatprep.subr.bf16.mxu1 %v5607_v20  ;;  %v5686_v19 = vld [vmem:[#allocation5 + $0xfd0] ss:$48 sps:$4 sm:$0xff]   ;;  %v5689_v20 = vld [vmem:[#allocation5 + $0xfd8] ss:$48 sps:$4 sm:$0xff]  }
 0x168   :  { %3918 = vmatpush1.bf16.msra.mxu0 %v5602_v21  ;;  %4047 = vmatpush1.bf16.msra.mxu1 %v5605_v22  ;;  %v5694_v21 = vld [vmem:[#allocation5 + $0x1034] ss:$48 sps:$4 sm:$0xff]   ;;  %v5697_v22 = vld [vmem:[#allocation5 + $0x103c] ss:$48 sps:$4 sm:$0xff]  }
 0x169   :  { %3919 = vmatprep.subr.bf16.mxu0 %v5610_v23  ;;  %4048 = vmatprep.subr.bf16.mxu1 %v5613_v24  ;;  %v5692_v23 = vld [vmem:[#allocation5 + $0x1030] ss:$48 sps:$4 sm:$0xff]   ;;  %v5695_v24 = vld [vmem:[#allocation5 + $0x1038] ss:$48 sps:$4 sm:$0xff]  }
 0x16c   :  { %3920 = vmatpush1.bf16.msra.mxu0 %v5608_v27  ;;  %4049 = vmatpush1.bf16.msra.mxu1 %v5611_v28  ;;  %v5700_v27 = vld [vmem:[#allocation5 + $0x1094] ss:$48 sps:$4 sm:$0xff]   ;;  %v5703_v28 = vld [vmem:[#allocation5 + $0x109c] ss:$48 sps:$4 sm:$0xff]  }
 0x16d   :  { %3921 = vmatprep.subr.bf16.mxu0 %v5616_v29  ;;  %4050 = vmatprep.subr.bf16.mxu1 %v5619_v30  ;;  %v5698_v29 = vld [vmem:[#allocation5 + $0x1090] ss:$48 sps:$4 sm:$0xff]   ;;  %v5701_v30 = vld [vmem:[#allocation5 + $0x1098] ss:$48 sps:$4 sm:$0xff]  }
 0x170   :  { %3922 = vmatpush1.bf16.msra.mxu0 %v5614_v31  ;;  %4051 = vmatpush1.bf16.msra.mxu1 %v5617_v32  ;;  %v5706_v31 = vld [vmem:[#allocation5 + $0x10f4] ss:$48 sps:$4 sm:$0xff]   ;;  %v5709_v32 = vld [vmem:[#allocation5 + $0x10fc] ss:$48 sps:$4 sm:$0xff]  }
 0x171   :  { %3923 = vmatprep.subr.bf16.mxu0 %v5622_v33  ;;  %4052 = vmatprep.subr.bf16.mxu1 %v5625_v34  ;;  %v5704_v33 = vld [vmem:[#allocation5 + $0x10f0] ss:$48 sps:$4 sm:$0xff]   ;;  %v5707_v34 = vld [vmem:[#allocation5 + $0x10f8] ss:$48 sps:$4 sm:$0xff]  }
 0x174   :  { %3924 = vmatpush1.bf16.msra.mxu0 %v5620_v35  ;;  %4053 = vmatpush1.bf16.msra.mxu1 %v5623_v37  ;;  %v5712_v35 = vld [vmem:[#allocation5 + $0x1154] ss:$48 sps:$4 sm:$0xff]   ;;  %v5715_v37 = vld [vmem:[#allocation5 + $0x115c] ss:$48 sps:$4 sm:$0xff]  }
 0x175   :  { %3936 = vmatprep.subr.bf16.mxu0 %v5628_v38  ;;  %4065 = vmatprep.subr.bf16.mxu1 %v5631_v39  ;;  %v5710_v38 = vld [vmem:[#allocation5 + $0x1150] ss:$48 sps:$4 sm:$0xff]   ;;  %v5713_v39 = vld [vmem:[#allocation5 + $0x1158] ss:$48 sps:$4 sm:$0xff]  }
 0x177   :  { %3926 = vmatmul.mubr.bf16.vlgmr.msra.gmra.mrb[4].mxu0 %v6191_v17  ;;  %4055 = vmatmul.mubr.bf16.vlgmr.msra.gmra.mrb[4].mxu1 %v6191_v17 }
 0x178   :  { %3937 = vmatpush1.bf16.msra.mxu0 %v5626_v40  ;;  %4066 = vmatpush1.bf16.msra.mxu1 %v5629_v41  ;;  %v5718_v40 = vld [vmem:[#allocation5 + $0x11b4] ss:$48 sps:$4 sm:$0xff]   ;;  %v5721_v41 = vld [vmem:[#allocation5 + $0x11bc] ss:$48 sps:$4 sm:$0xff]  }
 0x179   :  { %3938 = vmatprep.subr.bf16.mxu0 %v5634_v42  ;;  %4067 = vmatprep.subr.bf16.mxu1 %v5637_v43  ;;  %v5716_v42 = vld [vmem:[#allocation5 + $0x11b0] ss:$48 sps:$4 sm:$0xff]   ;;  %v5719_v43 = vld [vmem:[#allocation5 + $0x11b8] ss:$48 sps:$4 sm:$0xff]  }
 0x17a   :  { %3968 = vmatprep.mubr.bf16.mxu0 %v6195_v25  ;;  %4097 = vmatprep.mubr.bf16.mxu1 %v6195_v25 }
 0x17c   :  { %3939 = vmatpush1.bf16.msra.mxu0 %v5632_v44  ;;  %4068 = vmatpush1.bf16.msra.mxu1 %v5635_v45  ;;  %v5724_v44 = vld [vmem:[#allocation5 + $0x24] ss:$48 sps:$4 sm:$0xff]   ;;  %v5727_v45 = vld [vmem:[#allocation5 + $0x2c] ss:$48 sps:$4 sm:$0xff]  }
 0x17d   :  { %3940 = vmatprep.subr.bf16.mxu0 %v5640_v46  ;;  %4069 = vmatprep.subr.bf16.mxu1 %v5643_v47  ;;  %v5722_v46 = vld [vmem:[#allocation5 + $0x20] ss:$48 sps:$4 sm:$0xff]   ;;  %v5725_v47 = vld [vmem:[#allocation5 + $0x28] ss:$48 sps:$4 sm:$0xff]  }
 0x180   :  { %3941 = vmatpush1.bf16.msra.mxu0 %v5638_v48  ;;  %4070 = vmatpush1.bf16.msra.mxu1 %v5641_v49  ;;  %v5730_v48 = vld [vmem:[#allocation5 + $0x84] ss:$48 sps:$4 sm:$0xff]   ;;  %v5733_v49 = vld [vmem:[#allocation5 + $0x8c] ss:$48 sps:$4 sm:$0xff]  }
 0x181   :  { %3942 = vmatprep.subr.bf16.mxu0 %v5646_v51  ;;  %4071 = vmatprep.subr.bf16.mxu1 %v5649_v52  ;;  %v5728_v51 = vld [vmem:[#allocation5 + $0x80] ss:$48 sps:$4 sm:$0xff]   ;;  %v5731_v52 = vld [vmem:[#allocation5 + $0x88] ss:$48 sps:$4 sm:$0xff]  }
 0x184   :  { %3943 = vmatpush1.bf16.msra.mxu0 %v5644_v53  ;;  %4072 = vmatpush1.bf16.msra.mxu1 %v5647_v54  ;;  %v5736_v53 = vld [vmem:[#allocation5 + $0xe4] ss:$48 sps:$4 sm:$0xff]   ;;  %v5739_v54 = vld [vmem:[#allocation5 + $0xec] ss:$48 sps:$4 sm:$0xff]  }
 0x185   :  { %3944 = vmatprep.subr.bf16.mxu0 %v5652_v55  ;;  %4073 = vmatprep.subr.bf16.mxu1 %v5655_v56  ;;  %v652_v55 = vlaneseq  ;;  %v5734_v56 = vld [vmem:[#allocation5 + $0xe0] ss:$48 sps:$4 sm:$0xff]  }
 0x188   :  { %3945 = vmatpush1.bf16.msra.mxu0 %v5650_v57  ;;  %4074 = vmatpush1.bf16.msra.mxu1 %v5653_v58  ;;  %v5737_v57 = vld [vmem:[#allocation5 + $0xe8] ss:$48 sps:$4 sm:$0xff]   ;;  %v5742_v58 = vld [vmem:[#allocation5 + $0x144] ss:$48 sps:$4 sm:$0xff]  }
 0x189   :  { %3946 = vmatprep.subr.bf16.mxu0 %v5658_v59  ;;  %4075 = vmatprep.subr.bf16.mxu1 %v5661_v60  ;;  %v5745_v59 = vld [vmem:[#allocation5 + $0x14c] ss:$48 sps:$4 sm:$0xff]   ;;  %v6217_v60 = vshrl.u32 %v652_v55, 7  ;;  %v5776_v55 = vld [vmem:[#allocation5 + $0x380] ss:$48 sps:$4 sm:$0xff]  }
 0x18c   :  { %3947 = vmatpush1.bf16.msra.mxu0 %v5656_v61  ;;  %4076 = vmatpush1.bf16.msra.mxu1 %v5659_v62  ;;  %v5740_v61 = vld [vmem:[#allocation5 + $0x140] ss:$48 sps:$4 sm:$0xff]   ;;  %v5743_v62 = vld [vmem:[#allocation5 + $0x148] ss:$48 sps:$4 sm:$0xff]  }
 0x18d   :  { %3948 = vmatprep.subr.bf16.mxu0 %v5664_v63  ;;  %4077 = vmatprep.subr.bf16.mxu1 %v5667_v0  ;;  %v5748_v63 = vld [vmem:[#allocation5 + $0x1a4] ss:$48 sps:$4 sm:$0xff]   ;;  %v5751_v0 = vld [vmem:[#allocation5 + $0x1ac] ss:$48 sps:$4 sm:$0xff]  }
 0x190   :  { %3949 = vmatpush1.bf16.msra.mxu0 %v5662_v1  ;;  %4078 = vmatpush1.bf16.msra.mxu1 %v5665_v2  ;;  %v654_v1 = vsub.s32 0, %v6217_v60  ;;  %v662_v2 = vsub.s32 2, %v6217_v60 }
 0x191   :  { %3950 = vmatprep.subr.bf16.mxu0 %v5670_v3  ;;  %4079 = vmatprep.subr.bf16.mxu1 %v5673_v4  ;;  %v5749_v3 = vld [vmem:[#allocation5 + $0x1a8] ss:$48 sps:$4 sm:$0xff]   ;;  %v6221_v4 = vld [vmem:[#allocation7] sm:$0xff] }
 0x194   :  { %3951 = vmatpush1.bf16.msra.mxu0 %v5668_v5  ;;  %4080 = vmatpush1.bf16.msra.mxu1 %v5671_v6  ;;  %v658_v5 = vsub.s32 1, %v6217_v60  ;;  %v666_v6 = vsub.s32 3, %v6217_v60 }
 0x195   :  { %3952 = vmatprep.subr.bf16.mxu0 %v5676_v7  ;;  %4081 = vmatprep.subr.bf16.mxu1 %v5679_v8  ;;  %v5754_v7 = vld [vmem:[#allocation5 + $0x204] ss:$48 sps:$4 sm:$0xff]   ;;  %v5757_v8 = vld [vmem:[#allocation5 + $0x20c] ss:$48 sps:$4 sm:$0xff]  }
 0x198   :  { %3953 = vmatpush1.bf16.msra.mxu0 %v5674_v10  ;;  %4082 = vmatpush1.bf16.msra.mxu1 %v5677_v11  ;;  %v655_v10 = vrot.slane %v6221_v4, %v654_v1  ;;  %v663_v11 = vrot.slane %v6221_v4, %v662_v2 }
 0x199   :  { %3954 = vmatprep.subr.bf16.mxu0 %v5682_v12  ;;  %4083 = vmatprep.subr.bf16.mxu1 %v5685_v13  ;;  %v659_v12 = vrot.slane %v6221_v4, %v658_v5  ;;  %v667_v13 = vrot.slane %v6221_v4, %v666_v6 }
 0x19c   :  { %3955 = vmatpush1.bf16.msra.mxu0 %v5680_v14  ;;  %4084 = vmatpush1.bf16.msra.mxu1 %v5683_v15  ;;  %v5752_v14 = vld [vmem:[#allocation5 + $0x200] ss:$48 sps:$4 sm:$0xff]   ;;  %v5755_v15 = vld [vmem:[#allocation5 + $0x208] ss:$48 sps:$4 sm:$0xff]  }
 0x19d   :  { %3956 = vmatprep.subr.bf16.mxu0 %v5688_v16  ;;  %4085 = vmatprep.subr.bf16.mxu1 %v5691_v18  ;;  %v5760_v16 = vld [vmem:[#allocation5 + $0x264] ss:$48 sps:$4 sm:$0xff]   ;;  %v5763_v18 = vld [vmem:[#allocation5 + $0x26c] ss:$48 sps:$4 sm:$0xff]  }
 0x1a0   :  { %3957 = vmatpush1.bf16.msra.mxu0 %v5686_v19  ;;  %4086 = vmatpush1.bf16.msra.mxu1 %v5689_v20 }
 0x1a1   :  { %3958 = vmatprep.subr.bf16.mxu0 %v5694_v21  ;;  %4087 = vmatprep.subr.bf16.mxu1 %v5697_v22 }
 0x1a4   :  { %3959 = vmatpush1.bf16.msra.mxu0 %v5692_v23  ;;  %4088 = vmatpush1.bf16.msra.mxu1 %v5695_v24 }
 0x1a5   :  { %3960 = vmatprep.subr.bf16.mxu0 %v5700_v27  ;;  %4089 = vmatprep.subr.bf16.mxu1 %v5703_v28 }
 0x1a8   :  { %3961 = vmatpush1.bf16.msra.mxu0 %v5698_v29  ;;  %4090 = vmatpush1.bf16.msra.mxu1 %v5701_v30 }
 0x1a9   :  { %3962 = vmatprep.subr.bf16.mxu0 %v5706_v31  ;;  %4091 = vmatprep.subr.bf16.mxu1 %v5709_v32  ;;  %v5758_v31 = vld [vmem:[#allocation5 + $0x260] ss:$48 sps:$4 sm:$0xff]   ;;  %v5761_v32 = vld [vmem:[#allocation5 + $0x268] ss:$48 sps:$4 sm:$0xff]  }
 0x1ac   :  { %3963 = vmatpush1.bf16.msra.mxu0 %v5704_v33  ;;  %4092 = vmatpush1.bf16.msra.mxu1 %v5707_v34 }
 0x1ad   :  { %3964 = vmatprep.subr.bf16.mxu0 %v5712_v35  ;;  %4093 = vmatprep.subr.bf16.mxu1 %v5715_v37 }
 0x1b0   :  { %3965 = vmatpush1.bf16.msra.mxu0 %v5710_v38  ;;  %4094 = vmatpush1.bf16.msra.mxu1 %v5713_v39  ;;  %v5766_v38 = vld [vmem:[#allocation5 + $0x2c4] ss:$48 sps:$4 sm:$0xff]   ;;  %v5769_v39 = vld [vmem:[#allocation5 + $0x2cc] ss:$48 sps:$4 sm:$0xff]  }
 0x1b1   :  { %3966 = vmatprep.subr.bf16.mxu0 %v5718_v40  ;;  %4095 = vmatprep.subr.bf16.mxu1 %v5721_v41 }
 0x1b4   :  { %3967 = vmatpush1.bf16.msra.mxu0 %v5716_v42  ;;  %4096 = vmatpush1.bf16.msra.mxu1 %v5719_v43 }
 0x1b5   :  { %4108 = vmatprep.subr.bf16.mxu0 %v5724_v44  ;;  %4237 = vmatprep.subr.bf16.mxu1 %v5727_v45 }
 0x1b7   :  { %3969 = vmatmul.mubr.bf16.vlgmr.msra.gmra.mrb[4].mxu0 %v6199_v26  ;;  %4098 = vmatmul.mubr.bf16.vlgmr.msra.gmra.mrb[4].mxu1 %v6199_v26 }
 0x1b8   :  { %4109 = vmatpush1.bf16.msra.mxu0 %v5722_v46  ;;  %4238 = vmatpush1.bf16.msra.mxu1 %v5725_v47  ;;  %v5764_v46 = vld [vmem:[#allocation5 + $0x2c0] ss:$48 sps:$4 sm:$0xff]   ;;  %v5767_v47 = vld [vmem:[#allocation5 + $0x2c8] ss:$48 sps:$4 sm:$0xff]  }
 0x1b9   :  { %4110 = vmatprep.subr.bf16.mxu0 %v5730_v48  ;;  %4239 = vmatprep.subr.bf16.mxu1 %v5733_v49  ;;  %v5772_v48 = vld [vmem:[#allocation5 + $0x324] ss:$48 sps:$4 sm:$0xff]   ;;  %v5775_v49 = vld [vmem:[#allocation5 + $0x32c] ss:$48 sps:$4 sm:$0xff]  }
 0x1ba   :  { %4140 = vmatprep.mubr.bf16.mxu0 %v6179_v50  ;;  %4269 = vmatprep.mubr.bf16.mxu1 %v6179_v50  ;;  %v5746_v50 = vld [vmem:[#allocation5 + $0x1a0] ss:$48 sps:$4 sm:$0xff]  }
 0x1bc   :  { %4111 = vmatpush1.bf16.msra.mxu0 %v5728_v51  ;;  %4240 = vmatpush1.bf16.msra.mxu1 %v5731_v52  ;;  %v5770_v51 = vld [vmem:[#allocation5 + $0x320] ss:$48 sps:$4 sm:$0xff]   ;;  %v5773_v52 = vld [vmem:[#allocation5 + $0x328] ss:$48 sps:$4 sm:$0xff]  }
 0x1bd   :  { %4112 = vmatprep.subr.bf16.mxu0 %v5736_v53  ;;  %4241 = vmatprep.subr.bf16.mxu1 %v5739_v54  ;;  %v5778_v53 = vld [vmem:[#allocation5 + $0x384] ss:$48 sps:$4 sm:$0xff]   ;;  %v5781_v54 = vld [vmem:[#allocation5 + $0x38c] ss:$48 sps:$4 sm:$0xff]  }
 0x1c0   :  { %4113 = vmatpush1.bf16.msra.mxu0 %v5734_v56  ;;  %4242 = vmatpush1.bf16.msra.mxu1 %v5737_v57  ;;  %v5779_v56 = vld [vmem:[#allocation5 + $0x388] ss:$48 sps:$4 sm:$0xff]   ;;  %v5784_v57 = vld [vmem:[#allocation5 + $0x3e4] ss:$48 sps:$4 sm:$0xff]  }
 0x1c1   :  { %4114 = vmatprep.subr.bf16.mxu0 %v5742_v58  ;;  %4243 = vmatprep.subr.bf16.mxu1 %v5745_v59  ;;  %v5787_v58 = vld [vmem:[#allocation5 + $0x3ec] ss:$48 sps:$4 sm:$0xff]   ;;  %v5782_v59 = vld [vmem:[#allocation5 + $0x3e0] ss:$48 sps:$4 sm:$0xff]  }
 0x1c4   :  { %4115 = vmatpush1.bf16.msra.mxu0 %v5740_v61  ;;  %4244 = vmatpush1.bf16.msra.mxu1 %v5743_v62  ;;  %v5785_v61 = vld [vmem:[#allocation5 + $0x3e8] ss:$48 sps:$4 sm:$0xff]   ;;  %v5790_v62 = vld [vmem:[#allocation5 + $0x444] ss:$48 sps:$4 sm:$0xff]  }
 0x1c5   :  { %4116 = vmatprep.subr.bf16.mxu0 %v5748_v63  ;;  %4245 = vmatprep.subr.bf16.mxu1 %v5751_v0  ;;  %v5793_v63 = vld [vmem:[#allocation5 + $0x44c] ss:$48 sps:$4 sm:$0xff]   ;;  %v5788_v0 = vld [vmem:[#allocation5 + $0x440] ss:$48 sps:$4 sm:$0xff]  }
 0x1c8   :  { %4117 = vmatpush1.bf16.msra.mxu0 %v5746_v50  ;;  %4246 = vmatpush1.bf16.msra.mxu1 %v5749_v3  ;;  %v5791_v50 = vld [vmem:[#allocation5 + $0x448] ss:$48 sps:$4 sm:$0xff]   ;;  %v5796_v3 = vld [vmem:[#allocation5 + $0x4a4] ss:$48 sps:$4 sm:$0xff]  }
 0x1c9   :  { %4118 = vmatprep.subr.bf16.mxu0 %v5754_v7  ;;  %4247 = vmatprep.subr.bf16.mxu1 %v5757_v8  ;;  %v5799_v7 = vld [vmem:[#allocation5 + $0x4ac] ss:$48 sps:$4 sm:$0xff]   ;;  %v5794_v8 = vld [vmem:[#allocation5 + $0x4a0] ss:$48 sps:$4 sm:$0xff]  }
 0x1ca   :  { %v3712_v19 = vpop.f32.mrb[0].mxu0  ;;  %v3841_v20 = vpop.f32.mrb[0].mxu1 }
 0x1cb   :  { %v5068_v21 = vadd.f32 %v3712_v19, %v655_v10  ;;  %v5072_v22 = vadd.f32 %v3841_v20, %v663_v11  ;;  %v3714_v23 = vpop.f32.mrb[1].mxu0  ;;  %v3843_v24 = vpop.f32.mrb[1].mxu1  ;;  %v5809_v19 = vld [vmem:[#allocation5 + $0x568] ss:$48 sps:$4 sm:$0xff]   ;;  %v5814_v20 = vld [vmem:[#allocation5 + $0x5c4] ss:$48 sps:$4 sm:$0xff]  }
 0x1cc   :  { %v5069_v27 = vadd.f32 %v3714_v23, %v659_v12  ;;  %v5073_v28 = vadd.f32 %v3843_v24, %v667_v13  ;;  %v3716_v29 = vpop.f32.mrb[2].mxu0  ;;  %v3845_v30 = vpop.f32.mrb[2].mxu1  ;;  %4119 = vmatpush1.bf16.msra.mxu0 %v5752_v14  ;;  %4248 = vmatpush1.bf16.msra.mxu1 %v5755_v15  ;;  %v5803_v14 = vld [vmem:[#allocation5 + $0x508] ss:$48 sps:$4 sm:$0xff]   ;;  %v5808_v15 = vld [vmem:[#allocation5 + $0x564] ss:$48 sps:$4 sm:$0xff]  }
 0x1cd   :  { %v5070_v33 = vadd.f32 %v3716_v29, %v655_v10  ;;  %v5074_v34 = vadd.f32 %v3845_v30, %v663_v11  ;;  %v3718_v35 = vpop.f32.mrb[3].mxu0  ;;  %v3847_v37 = vpop.f32.mrb[3].mxu1  ;;  %4120 = vmatprep.subr.bf16.mxu0 %v5760_v16  ;;  %4249 = vmatprep.subr.bf16.mxu1 %v5763_v18  ;;  %v5797_v10 = vld [vmem:[#allocation5 + $0x4a8] ss:$48 sps:$4 sm:$0xff]   ;;  %v5802_v11 = vld [vmem:[#allocation5 + $0x504] ss:$48 sps:$4 sm:$0xff]  }
 0x1ce   :  { %v5056_v40 = vpack.c.bf16 %v5069_v27, %v5068_v21  ;;  %v5057_v41 = vpack.c.bf16 %v5073_v28, %v5072_v22  ;;  %v5071_v42 = vadd.f32 %v3718_v35, %v659_v12  ;;  %v5075_v43 = vadd.f32 %v3847_v37, %v667_v13  ;;  %v5805_v12 = vld [vmem:[#allocation5 + $0x50c] ss:$48 sps:$4 sm:$0xff]   ;;  %v5800_v13 = vld [vmem:[#allocation5 + $0x500] ss:$48 sps:$4 sm:$0xff]   ;;  %v5815_v23 = vld [vmem:[#allocation5 + $0x5c8] ss:$48 sps:$4 sm:$0xff]  }
 0x1cf   :  { %v5811_v16 = vld [vmem:[#allocation5 + $0x56c] ss:$48 sps:$4 sm:$0xff]   ;;  %v5806_v18 = vld [vmem:[#allocation5 + $0x560] ss:$48 sps:$4 sm:$0xff]   ;;  %v5820_v24 = vld [vmem:[#allocation5 + $0x624] ss:$48 sps:$4 sm:$0xff]  }
 0x1d0   :  { %4438 = vst [vmem:[#allocation8] sm:$0xff] %v5056_v40  ;;  %4439 = vst [vmem:[#allocation8 + $0x8] sm:$0xff] %v5057_v41  ;;  %v5062_v44 = vpack.c.bf16 %v5071_v42, %v5070_v33  ;;  %v5063_v45 = vpack.c.bf16 %v5075_v43, %v5074_v34  ;;  %4121 = vmatpush1.bf16.msra.mxu0 %v5758_v31  ;;  %4250 = vmatpush1.bf16.msra.mxu1 %v5761_v32  ;;  %v5817_v21 = vld [vmem:[#allocation5 + $0x5cc] ss:$48 sps:$4 sm:$0xff]   ;;  %v5812_v22 = vld [vmem:[#allocation5 + $0x5c0] ss:$48 sps:$4 sm:$0xff]  }
 0x1d1   :  { %4122 = vmatprep.subr.bf16.mxu0 %v5766_v38  ;;  %4251 = vmatprep.subr.bf16.mxu1 %v5769_v39  ;;  %v5823_v27 = vld [vmem:[#allocation5 + $0x62c] ss:$48 sps:$4 sm:$0xff]   ;;  %v5818_v28 = vld [vmem:[#allocation5 + $0x620] ss:$48 sps:$4 sm:$0xff]   ;;  %v5821_v29 = vld [vmem:[#allocation5 + $0x628] ss:$48 sps:$4 sm:$0xff]  }
 0x1d2   :  { %4444 = vst [vmem:[#allocation8 + $0x30] sm:$0xff] %v5062_v44  ;;  %4445 = vst [vmem:[#allocation8 + $0x38] sm:$0xff] %v5063_v45  ;;  %v5826_v30 = vld [vmem:[#allocation5 + $0x684] ss:$48 sps:$4 sm:$0xff]   ;;  %v5829_v31 = vld [vmem:[#allocation5 + $0x68c] ss:$48 sps:$4 sm:$0xff]  }
 0x1d3   :  { %v5824_v32 = vld [vmem:[#allocation5 + $0x680] ss:$48 sps:$4 sm:$0xff]   ;;  %v5827_v33 = vld [vmem:[#allocation5 + $0x688] ss:$48 sps:$4 sm:$0xff]   ;;  %v5832_v34 = vld [vmem:[#allocation5 + $0x6e4] ss:$48 sps:$4 sm:$0xff]  }
 0x1d4   :  { %4123 = vmatpush1.bf16.msra.mxu0 %v5764_v46  ;;  %4252 = vmatpush1.bf16.msra.mxu1 %v5767_v47  ;;  %v5835_v35 = vld [vmem:[#allocation5 + $0x6ec] ss:$48 sps:$4 sm:$0xff]   ;;  %v5830_v37 = vld [vmem:[#allocation5 + $0x6e0] ss:$48 sps:$4 sm:$0xff]   ;;  %v5833_v38 = vld [vmem:[#allocation5 + $0x6e8] ss:$48 sps:$4 sm:$0xff]  }
 0x1d5   :  { %4124 = vmatprep.subr.bf16.mxu0 %v5772_v48  ;;  %4253 = vmatprep.subr.bf16.mxu1 %v5775_v49  ;;  %v5838_v39 = vld [vmem:[#allocation5 + $0x744] ss:$48 sps:$4 sm:$0xff]   ;;  %v5836_v40 = vld [vmem:[#allocation5 + $0x740] ss:$48 sps:$4 sm:$0xff]   ;;  %v5839_v41 = vld [vmem:[#allocation5 + $0x748] ss:$48 sps:$4 sm:$0xff]  }
 0x1d6   :  { %v5844_v42 = vld [vmem:[#allocation5 + $0x7a4] ss:$48 sps:$4 sm:$0xff]   ;;  %v5847_v43 = vld [vmem:[#allocation5 + $0x7ac] ss:$48 sps:$4 sm:$0xff]   ;;  %v5842_v44 = vld [vmem:[#allocation5 + $0x7a0] ss:$48 sps:$4 sm:$0xff]  }
 0x1d7   :  { %v5850_v45 = vld [vmem:[#allocation5 + $0x804] ss:$48 sps:$4 sm:$0xff]   ;;  %v5853_v46 = vld [vmem:[#allocation5 + $0x80c] ss:$48 sps:$4 sm:$0xff]   ;;  %v5848_v47 = vld [vmem:[#allocation5 + $0x800] ss:$48 sps:$4 sm:$0xff]  }
 0x1d8   :  { %4125 = vmatpush1.bf16.msra.mxu0 %v5770_v51  ;;  %4254 = vmatpush1.bf16.msra.mxu1 %v5773_v52  ;;  %v5851_v48 = vld [vmem:[#allocation5 + $0x808] ss:$48 sps:$4 sm:$0xff]   ;;  %v5856_v49 = vld [vmem:[#allocation5 + $0x864] ss:$48 sps:$4 sm:$0xff]   ;;  %v5859_v51 = vld [vmem:[#allocation5 + $0x86c] ss:$48 sps:$4 sm:$0xff]  }
 0x1d9   :  { %4126 = vmatprep.subr.bf16.mxu0 %v5778_v53  ;;  %4255 = vmatprep.subr.bf16.mxu1 %v5781_v54  ;;  %v5854_v52 = vld [vmem:[#allocation5 + $0x860] ss:$48 sps:$4 sm:$0xff]   ;;  %v5857_v53 = vld [vmem:[#allocation5 + $0x868] ss:$48 sps:$4 sm:$0xff]   ;;  %v5862_v54 = vld [vmem:[#allocation5 + $0x8c4] ss:$48 sps:$4 sm:$0xff]  }
 0x1dc   :  { %4127 = vmatpush1.bf16.msra.mxu0 %v5776_v55  ;;  %4256 = vmatpush1.bf16.msra.mxu1 %v5779_v56  ;;  %v5865_v55 = vld [vmem:[#allocation5 + $0x8cc] ss:$48 sps:$4 sm:$0xff]   ;;  %v5860_v56 = vld [vmem:[#allocation5 + $0x8c0] ss:$48 sps:$4 sm:$0xff]  }
 0x1dd   :  { %4128 = vmatprep.subr.bf16.mxu0 %v5784_v57  ;;  %4257 = vmatprep.subr.bf16.mxu1 %v5787_v58  ;;  %v5863_v57 = vld [vmem:[#allocation5 + $0x8c8] ss:$48 sps:$4 sm:$0xff]   ;;  %v5868_v58 = vld [vmem:[#allocation5 + $0x924] ss:$48 sps:$4 sm:$0xff]  }
 0x1e0   :  { %4129 = vmatpush1.bf16.msra.mxu0 %v5782_v59  ;;  %4258 = vmatpush1.bf16.msra.mxu1 %v5785_v61  ;;  %v5871_v59 = vld [vmem:[#allocation5 + $0x92c] ss:$48 sps:$4 sm:$0xff]   ;;  %v5866_v61 = vld [vmem:[#allocation5 + $0x920] ss:$48 sps:$4 sm:$0xff]  }
 0x1e1   :  { %4130 = vmatprep.subr.bf16.mxu0 %v5790_v62  ;;  %4259 = vmatprep.subr.bf16.mxu1 %v5793_v63  ;;  %v5869_v62 = vld [vmem:[#allocation5 + $0x928] ss:$48 sps:$4 sm:$0xff]   ;;  %v5874_v63 = vld [vmem:[#allocation5 + $0x984] ss:$48 sps:$4 sm:$0xff]  }
 0x1e4   :  { %4131 = vmatpush1.bf16.msra.mxu0 %v5788_v0  ;;  %4260 = vmatpush1.bf16.msra.mxu1 %v5791_v50  ;;  %v5877_v0 = vld [vmem:[#allocation5 + $0x98c] ss:$48 sps:$4 sm:$0xff]   ;;  %v5872_v50 = vld [vmem:[#allocation5 + $0x980] ss:$48 sps:$4 sm:$0xff]  }
 0x1e5   :  { %4132 = vmatprep.subr.bf16.mxu0 %v5796_v3  ;;  %4261 = vmatprep.subr.bf16.mxu1 %v5799_v7  ;;  %v5875_v3 = vld [vmem:[#allocation5 + $0x988] ss:$48 sps:$4 sm:$0xff]   ;;  %v5880_v7 = vld [vmem:[#allocation5 + $0x9e4] ss:$48 sps:$4 sm:$0xff]  }
 0x1e8   :  { %4133 = vmatpush1.bf16.msra.mxu0 %v5794_v8  ;;  %4262 = vmatpush1.bf16.msra.mxu1 %v5797_v10  ;;  %v5883_v8 = vld [vmem:[#allocation5 + $0x9ec] ss:$48 sps:$4 sm:$0xff]   ;;  %v5878_v10 = vld [vmem:[#allocation5 + $0x9e0] ss:$48 sps:$4 sm:$0xff]  }
 0x1e9   :  { %4134 = vmatprep.subr.bf16.mxu0 %v5802_v11  ;;  %4263 = vmatprep.subr.bf16.mxu1 %v5805_v12  ;;  %v5881_v11 = vld [vmem:[#allocation5 + $0x9e8] ss:$48 sps:$4 sm:$0xff]   ;;  %v5886_v12 = vld [vmem:[#allocation5 + $0xa44] ss:$48 sps:$4 sm:$0xff]  }
 0x1ec   :  { %4135 = vmatpush1.bf16.msra.mxu0 %v5800_v13  ;;  %4264 = vmatpush1.bf16.msra.mxu1 %v5803_v14  ;;  %v5889_v13 = vld [vmem:[#allocation5 + $0xa4c] ss:$48 sps:$4 sm:$0xff]   ;;  %v5884_v14 = vld [vmem:[#allocation5 + $0xa40] ss:$48 sps:$4 sm:$0xff]  }
 0x1ed   :  { %4136 = vmatprep.subr.bf16.mxu0 %v5808_v15  ;;  %4265 = vmatprep.subr.bf16.mxu1 %v5811_v16  ;;  %v5887_v15 = vld [vmem:[#allocation5 + $0xa48] ss:$48 sps:$4 sm:$0xff]   ;;  %v5892_v16 = vld [vmem:[#allocation5 + $0xaa4] ss:$48 sps:$4 sm:$0xff]  }
 0x1f0   :  { %4137 = vmatpush1.bf16.msra.mxu0 %v5806_v18  ;;  %4266 = vmatpush1.bf16.msra.mxu1 %v5809_v19  ;;  %v5895_v18 = vld [vmem:[#allocation5 + $0xaac] ss:$48 sps:$4 sm:$0xff]   ;;  %v5890_v19 = vld [vmem:[#allocation5 + $0xaa0] ss:$48 sps:$4 sm:$0xff]  }
 0x1f1   :  { %4138 = vmatprep.subr.bf16.mxu0 %v5814_v20  ;;  %4267 = vmatprep.subr.bf16.mxu1 %v5817_v21  ;;  %v5893_v20 = vld [vmem:[#allocation5 + $0xaa8] ss:$48 sps:$4 sm:$0xff]   ;;  %v5898_v21 = vld [vmem:[#allocation5 + $0xb04] ss:$48 sps:$4 sm:$0xff]  }
 0x1f4   :  { %4139 = vmatpush1.bf16.msra.mxu0 %v5812_v22  ;;  %4268 = vmatpush1.bf16.msra.mxu1 %v5815_v23  ;;  %v5901_v22 = vld [vmem:[#allocation5 + $0xb0c] ss:$48 sps:$4 sm:$0xff]   ;;  %v5896_v23 = vld [vmem:[#allocation5 + $0xb00] ss:$48 sps:$4 sm:$0xff]  }
 0x1f5   :  { %4151 = vmatprep.subr.bf16.mxu0 %v5820_v24  ;;  %4280 = vmatprep.subr.bf16.mxu1 %v5823_v27  ;;  %v5899_v24 = vld [vmem:[#allocation5 + $0xb08] ss:$48 sps:$4 sm:$0xff]   ;;  %v5904_v27 = vld [vmem:[#allocation5 + $0xb64] ss:$48 sps:$4 sm:$0xff]  }
 0x1f7   :  { %4141 = vmatmul.mubr.bf16.vlgmr.msra.gmra.mrb[8].mxu0 %v6183_v9  ;;  %4270 = vmatmul.mubr.bf16.vlgmr.msra.gmra.mrb[8].mxu1 %v6183_v9  ;;  %v5841_v9 = vld [vmem:[#allocation5 + $0x74c] ss:$48 sps:$4 sm:$0xff]  }
 0x1f8   :  { %4152 = vmatpush1.bf16.msra.mxu0 %v5818_v28  ;;  %4281 = vmatpush1.bf16.msra.mxu1 %v5821_v29  ;;  %v5907_v28 = vld [vmem:[#allocation5 + $0xb6c] ss:$48 sps:$4 sm:$0xff]   ;;  %v5902_v29 = vld [vmem:[#allocation5 + $0xb60] ss:$48 sps:$4 sm:$0xff]  }
 0x1f9   :  { %4153 = vmatprep.subr.bf16.mxu0 %v5826_v30  ;;  %4282 = vmatprep.subr.bf16.mxu1 %v5829_v31  ;;  %v5905_v30 = vld [vmem:[#allocation5 + $0xb68] ss:$48 sps:$4 sm:$0xff]   ;;  %v5910_v31 = vld [vmem:[#allocation5 + $0xbc4] ss:$48 sps:$4 sm:$0xff]  }
 0x1fa   :  { %4183 = vmatprep.mubr.bf16.mxu0 %v6187_v36  ;;  %4312 = vmatprep.mubr.bf16.mxu1 %v6187_v36  ;;  %v5845_v36 = vld [vmem:[#allocation5 + $0x7a8] ss:$48 sps:$4 sm:$0xff]  }
 0x1fc   :  { %4154 = vmatpush1.bf16.msra.mxu0 %v5824_v32  ;;  %4283 = vmatpush1.bf16.msra.mxu1 %v5827_v33  ;;  %v5913_v32 = vld [vmem:[#allocation5 + $0xbcc] ss:$48 sps:$4 sm:$0xff]   ;;  %v5908_v33 = vld [vmem:[#allocation5 + $0xbc0] ss:$48 sps:$4 sm:$0xff]  }
 0x1fd   :  { %4155 = vmatprep.subr.bf16.mxu0 %v5832_v34  ;;  %4284 = vmatprep.subr.bf16.mxu1 %v5835_v35  ;;  %v5911_v34 = vld [vmem:[#allocation5 + $0xbc8] ss:$48 sps:$4 sm:$0xff]   ;;  %v5916_v35 = vld [vmem:[#allocation5 + $0xc24] ss:$48 sps:$4 sm:$0xff]  }
 0x200   :  { %4156 = vmatpush1.bf16.msra.mxu0 %v5830_v37  ;;  %4285 = vmatpush1.bf16.msra.mxu1 %v5833_v38  ;;  %v5919_v37 = vld [vmem:[#allocation5 + $0xc2c] ss:$48 sps:$4 sm:$0xff]   ;;  %v5914_v38 = vld [vmem:[#allocation5 + $0xc20] ss:$48 sps:$4 sm:$0xff]  }
 0x201   :  { %4157 = vmatprep.subr.bf16.mxu0 %v5838_v39  ;;  %4286 = vmatprep.subr.bf16.mxu1 %v5841_v9  ;;  %v5917_v39 = vld [vmem:[#allocation5 + $0xc28] ss:$48 sps:$4 sm:$0xff]   ;;  %v5922_v9 = vld [vmem:[#allocation5 + $0xc84] ss:$48 sps:$4 sm:$0xff]  }
 0x204   :  { %4158 = vmatpush1.bf16.msra.mxu0 %v5836_v40  ;;  %4287 = vmatpush1.bf16.msra.mxu1 %v5839_v41  ;;  %v5925_v40 = vld [vmem:[#allocation5 + $0xc8c] ss:$48 sps:$4 sm:$0xff]   ;;  %v5920_v41 = vld [vmem:[#allocation5 + $0xc80] ss:$48 sps:$4 sm:$0xff]  }
 0x205   :  { %4159 = vmatprep.subr.bf16.mxu0 %v5844_v42  ;;  %4288 = vmatprep.subr.bf16.mxu1 %v5847_v43  ;;  %v5923_v42 = vld [vmem:[#allocation5 + $0xc88] ss:$48 sps:$4 sm:$0xff]   ;;  %v5928_v43 = vld [vmem:[#allocation5 + $0xce4] ss:$48 sps:$4 sm:$0xff]  }
 0x208   :  { %4160 = vmatpush1.bf16.msra.mxu0 %v5842_v44  ;;  %4289 = vmatpush1.bf16.msra.mxu1 %v5845_v36  ;;  %v5931_v44 = vld [vmem:[#allocation5 + $0xcec] ss:$48 sps:$4 sm:$0xff]   ;;  %v5926_v36 = vld [vmem:[#allocation5 + $0xce0] ss:$48 sps:$4 sm:$0xff]  }
 0x209   :  { %4161 = vmatprep.subr.bf16.mxu0 %v5850_v45  ;;  %4290 = vmatprep.subr.bf16.mxu1 %v5853_v46  ;;  %v5929_v45 = vld [vmem:[#allocation5 + $0xce8] ss:$48 sps:$4 sm:$0xff]   ;;  %v5934_v46 = vld [vmem:[#allocation5 + $0xd44] ss:$48 sps:$4 sm:$0xff]  }
 0x20c   :  { %4162 = vmatpush1.bf16.msra.mxu0 %v5848_v47  ;;  %4291 = vmatpush1.bf16.msra.mxu1 %v5851_v48  ;;  %v5932_v47 = vld [vmem:[#allocation5 + $0xd40] ss:$48 sps:$4 sm:$0xff]   ;;  %v5935_v48 = vld [vmem:[#allocation5 + $0xd48] ss:$48 sps:$4 sm:$0xff]  }
 0x20d   :  { %4163 = vmatprep.subr.bf16.mxu0 %v5856_v49  ;;  %4292 = vmatprep.subr.bf16.mxu1 %v5859_v51  ;;  %v5940_v49 = vld [vmem:[#allocation5 + $0xda4] ss:$48 sps:$4 sm:$0xff]   ;;  %v5943_v51 = vld [vmem:[#allocation5 + $0xdac] ss:$48 sps:$4 sm:$0xff]  }
 0x210   :  { %4164 = vmatpush1.bf16.msra.mxu0 %v5854_v52  ;;  %4293 = vmatpush1.bf16.msra.mxu1 %v5857_v53  ;;  %v5938_v52 = vld [vmem:[#allocation5 + $0xda0] ss:$48 sps:$4 sm:$0xff]   ;;  %v5946_v53 = vld [vmem:[#allocation5 + $0xe04] ss:$48 sps:$4 sm:$0xff]  }
 0x211   :  { %4165 = vmatprep.subr.bf16.mxu0 %v5862_v54  ;;  %4294 = vmatprep.subr.bf16.mxu1 %v5865_v55  ;;  %v5949_v54 = vld [vmem:[#allocation5 + $0xe0c] ss:$48 sps:$4 sm:$0xff]   ;;  %v5944_v55 = vld [vmem:[#allocation5 + $0xe00] ss:$48 sps:$4 sm:$0xff]  }
 0x214   :  { %4166 = vmatpush1.bf16.msra.mxu0 %v5860_v56  ;;  %4295 = vmatpush1.bf16.msra.mxu1 %v5863_v57  ;;  %v5947_v56 = vld [vmem:[#allocation5 + $0xe08] ss:$48 sps:$4 sm:$0xff]   ;;  %v5952_v57 = vld [vmem:[#allocation5 + $0xe64] ss:$48 sps:$4 sm:$0xff]  }
 0x215   :  { %4167 = vmatprep.subr.bf16.mxu0 %v5868_v58  ;;  %4296 = vmatprep.subr.bf16.mxu1 %v5871_v59  ;;  %v5955_v58 = vld [vmem:[#allocation5 + $0xe6c] ss:$48 sps:$4 sm:$0xff]   ;;  %v5950_v59 = vld [vmem:[#allocation5 + $0xe60] ss:$48 sps:$4 sm:$0xff]  }
 0x218   :  { %4168 = vmatpush1.bf16.msra.mxu0 %v5866_v61  ;;  %4297 = vmatpush1.bf16.msra.mxu1 %v5869_v62  ;;  %v5953_v61 = vld [vmem:[#allocation5 + $0xe68] ss:$48 sps:$4 sm:$0xff]   ;;  %v5958_v62 = vld [vmem:[#allocation5 + $0xec4] ss:$48 sps:$4 sm:$0xff]  }
 0x219   :  { %4169 = vmatprep.subr.bf16.mxu0 %v5874_v63  ;;  %4298 = vmatprep.subr.bf16.mxu1 %v5877_v0  ;;  %v5961_v63 = vld [vmem:[#allocation5 + $0xecc] ss:$48 sps:$4 sm:$0xff]   ;;  %v5956_v0 = vld [vmem:[#allocation5 + $0xec0] ss:$48 sps:$4 sm:$0xff]  }
 0x21c   :  { %4170 = vmatpush1.bf16.msra.mxu0 %v5872_v50  ;;  %4299 = vmatpush1.bf16.msra.mxu1 %v5875_v3  ;;  %v5959_v50 = vld [vmem:[#allocation5 + $0xec8] ss:$48 sps:$4 sm:$0xff]   ;;  %v5964_v3 = vld [vmem:[#allocation5 + $0xf24] ss:$48 sps:$4 sm:$0xff]  }
 0x21d   :  { %4171 = vmatprep.subr.bf16.mxu0 %v5880_v7  ;;  %4300 = vmatprep.subr.bf16.mxu1 %v5883_v8  ;;  %v5967_v7 = vld [vmem:[#allocation5 + $0xf2c] ss:$48 sps:$4 sm:$0xff]   ;;  %v5962_v8 = vld [vmem:[#allocation5 + $0xf20] ss:$48 sps:$4 sm:$0xff]  }
 0x220   :  { %4172 = vmatpush1.bf16.msra.mxu0 %v5878_v10  ;;  %4301 = vmatpush1.bf16.msra.mxu1 %v5881_v11  ;;  %v5965_v10 = vld [vmem:[#allocation5 + $0xf28] ss:$48 sps:$4 sm:$0xff]   ;;  %v5970_v11 = vld [vmem:[#allocation5 + $0xf84] ss:$48 sps:$4 sm:$0xff]  }
 0x221   :  { %4173 = vmatprep.subr.bf16.mxu0 %v5886_v12  ;;  %4302 = vmatprep.subr.bf16.mxu1 %v5889_v13  ;;  %v5973_v12 = vld [vmem:[#allocation5 + $0xf8c] ss:$48 sps:$4 sm:$0xff]   ;;  %v5968_v13 = vld [vmem:[#allocation5 + $0xf80] ss:$48 sps:$4 sm:$0xff]  }
 0x224   :  { %4174 = vmatpush1.bf16.msra.mxu0 %v5884_v14  ;;  %4303 = vmatpush1.bf16.msra.mxu1 %v5887_v15  ;;  %v5971_v14 = vld [vmem:[#allocation5 + $0xf88] ss:$48 sps:$4 sm:$0xff]   ;;  %v5976_v15 = vld [vmem:[#allocation5 + $0xfe4] ss:$48 sps:$4 sm:$0xff]  }
 0x225   :  { %4175 = vmatprep.subr.bf16.mxu0 %v5892_v16  ;;  %4304 = vmatprep.subr.bf16.mxu1 %v5895_v18  ;;  %v5979_v16 = vld [vmem:[#allocation5 + $0xfec] ss:$48 sps:$4 sm:$0xff]   ;;  %v5974_v18 = vld [vmem:[#allocation5 + $0xfe0] ss:$48 sps:$4 sm:$0xff]  }
 0x228   :  { %4176 = vmatpush1.bf16.msra.mxu0 %v5890_v19  ;;  %4305 = vmatpush1.bf16.msra.mxu1 %v5893_v20  ;;  %v5977_v19 = vld [vmem:[#allocation5 + $0xfe8] ss:$48 sps:$4 sm:$0xff]   ;;  %v5982_v20 = vld [vmem:[#allocation5 + $0x1044] ss:$48 sps:$4 sm:$0xff]  }
 0x229   :  { %4177 = vmatprep.subr.bf16.mxu0 %v5898_v21  ;;  %4306 = vmatprep.subr.bf16.mxu1 %v5901_v22  ;;  %v5985_v21 = vld [vmem:[#allocation5 + $0x104c] ss:$48 sps:$4 sm:$0xff]   ;;  %v5980_v22 = vld [vmem:[#allocation5 + $0x1040] ss:$48 sps:$4 sm:$0xff]  }
 0x22c   :  { %4178 = vmatpush1.bf16.msra.mxu0 %v5896_v23  ;;  %4307 = vmatpush1.bf16.msra.mxu1 %v5899_v24  ;;  %v5983_v23 = vld [vmem:[#allocation5 + $0x1048] ss:$48 sps:$4 sm:$0xff]   ;;  %v5988_v24 = vld [vmem:[#allocation5 + $0x10a4] ss:$48 sps:$4 sm:$0xff]  }
 0x22d   :  { %4179 = vmatprep.subr.bf16.mxu0 %v5904_v27  ;;  %4308 = vmatprep.subr.bf16.mxu1 %v5907_v28  ;;  %v5991_v27 = vld [vmem:[#allocation5 + $0x10ac] ss:$48 sps:$4 sm:$0xff]   ;;  %v5986_v28 = vld [vmem:[#allocation5 + $0x10a0] ss:$48 sps:$4 sm:$0xff]  }
 0x230   :  { %4180 = vmatpush1.bf16.msra.mxu0 %v5902_v29  ;;  %4309 = vmatpush1.bf16.msra.mxu1 %v5905_v30  ;;  %v5989_v29 = vld [vmem:[#allocation5 + $0x10a8] ss:$48 sps:$4 sm:$0xff]   ;;  %v5994_v30 = vld [vmem:[#allocation5 + $0x1104] ss:$48 sps:$4 sm:$0xff]  }
 0x231   :  { %4181 = vmatprep.subr.bf16.mxu0 %v5910_v31  ;;  %4310 = vmatprep.subr.bf16.mxu1 %v5913_v32  ;;  %v5997_v31 = vld [vmem:[#allocation5 + $0x110c] ss:$48 sps:$4 sm:$0xff]   ;;  %v5992_v32 = vld [vmem:[#allocation5 + $0x1100] ss:$48 sps:$4 sm:$0xff]  }
 0x234   :  { %4182 = vmatpush1.bf16.msra.mxu0 %v5908_v33  ;;  %4311 = vmatpush1.bf16.msra.mxu1 %v5911_v34  ;;  %v5995_v33 = vld [vmem:[#allocation5 + $0x1108] ss:$48 sps:$4 sm:$0xff]   ;;  %v6000_v34 = vld [vmem:[#allocation5 + $0x1164] ss:$48 sps:$4 sm:$0xff]  }
 0x235   :  { %4194 = vmatprep.subr.bf16.mxu0 %v5916_v35  ;;  %4323 = vmatprep.subr.bf16.mxu1 %v5919_v37  ;;  %v6003_v35 = vld [vmem:[#allocation5 + $0x116c] ss:$48 sps:$4 sm:$0xff]   ;;  %v5998_v37 = vld [vmem:[#allocation5 + $0x1160] ss:$48 sps:$4 sm:$0xff]  }
 0x237   :  { %4184 = vmatmul.mubr.bf16.vlgmr.msra.gmra.mrb[8].mxu0 %v6191_v17  ;;  %4313 = vmatmul.mubr.bf16.vlgmr.msra.gmra.mrb[8].mxu1 %v6191_v17  ;;  %v5937_v17 = vld [vmem:[#allocation5 + $0xd4c] ss:$48 sps:$4 sm:$0xff]  }
 0x238   :  { %4195 = vmatpush1.bf16.msra.mxu0 %v5914_v38  ;;  %4324 = vmatpush1.bf16.msra.mxu1 %v5917_v39  ;;  %v6001_v38 = vld [vmem:[#allocation5 + $0x1168] ss:$48 sps:$4 sm:$0xff]   ;;  %v6006_v39 = vld [vmem:[#allocation5 + $0x11c4] ss:$48 sps:$4 sm:$0xff]  }
 0x239   :  { %4196 = vmatprep.subr.bf16.mxu0 %v5922_v9  ;;  %4325 = vmatprep.subr.bf16.mxu1 %v5925_v40  ;;  %v6009_v9 = vld [vmem:[#allocation5 + $0x11cc] ss:$48 sps:$4 sm:$0xff]   ;;  %v6004_v40 = vld [vmem:[#allocation5 + $0x11c0] ss:$48 sps:$4 sm:$0xff]  }
 0x23a   :  { %4226 = vmatprep.mubr.bf16.mxu0 %v6195_v25  ;;  %4355 = vmatprep.mubr.bf16.mxu1 %v6195_v25  ;;  %v5941_v25 = vld [vmem:[#allocation5 + $0xda8] ss:$48 sps:$4 sm:$0xff]  }
 0x23c   :  { %4197 = vmatpush1.bf16.msra.mxu0 %v5920_v41  ;;  %4326 = vmatpush1.bf16.msra.mxu1 %v5923_v42  ;;  %v6007_v41 = vld [vmem:[#allocation5 + $0x11c8] ss:$48 sps:$4 sm:$0xff]   ;;  %v670_v42 = vsub.s32 4, %v6217_v60 }
 0x23d   :  { %4198 = vmatprep.subr.bf16.mxu0 %v5928_v43  ;;  %4327 = vmatprep.subr.bf16.mxu1 %v5931_v44  ;;  %v678_v43 = vsub.s32 6, %v6217_v60  ;;  %v674_v44 = vsub.s32 5, %v6217_v60 }
 0x240   :  { %4199 = vmatpush1.bf16.msra.mxu0 %v5926_v36  ;;  %4328 = vmatpush1.bf16.msra.mxu1 %v5929_v45  ;;  %v682_v36 = vsub.s32 7, %v6217_v60  ;;  %v671_v45 = vrot.slane %v6221_v4, %v670_v42 }
 0x241   :  { %4200 = vmatprep.subr.bf16.mxu0 %v5934_v46  ;;  %4329 = vmatprep.subr.bf16.mxu1 %v5937_v17  ;;  %v679_v46 = vrot.slane %v6221_v4, %v678_v43  ;;  %v675_v17 = vrot.slane %v6221_v4, %v674_v44 }
 0x244   :  { %4201 = vmatpush1.bf16.msra.mxu0 %v5932_v47  ;;  %4330 = vmatpush1.bf16.msra.mxu1 %v5935_v48  ;;  %v683_v47 = vrot.slane %v6221_v4, %v682_v36 }
 0x245   :  { %4202 = vmatprep.subr.bf16.mxu0 %v5940_v49  ;;  %4331 = vmatprep.subr.bf16.mxu1 %v5943_v51 }
 0x248   :  { %4203 = vmatpush1.bf16.msra.mxu0 %v5938_v52  ;;  %4332 = vmatpush1.bf16.msra.mxu1 %v5941_v25 }
 0x249   :  { %4204 = vmatprep.subr.bf16.mxu0 %v5946_v53  ;;  %4333 = vmatprep.subr.bf16.mxu1 %v5949_v54 }
 0x24c   :  { %4205 = vmatpush1.bf16.msra.mxu0 %v5944_v55  ;;  %4334 = vmatpush1.bf16.msra.mxu1 %v5947_v56 }
 0x24d   :  { %4206 = vmatprep.subr.bf16.mxu0 %v5952_v57  ;;  %4335 = vmatprep.subr.bf16.mxu1 %v5955_v58 }
 0x250   :  { %4207 = vmatpush1.bf16.msra.mxu0 %v5950_v59  ;;  %4336 = vmatpush1.bf16.msra.mxu1 %v5953_v61 }
 0x251   :  { %4208 = vmatprep.subr.bf16.mxu0 %v5958_v62  ;;  %4337 = vmatprep.subr.bf16.mxu1 %v5961_v63 }
 0x254   :  { %4209 = vmatpush1.bf16.msra.mxu0 %v5956_v0  ;;  %4338 = vmatpush1.bf16.msra.mxu1 %v5959_v50 }
 0x255   :  { %4210 = vmatprep.subr.bf16.mxu0 %v5964_v3  ;;  %4339 = vmatprep.subr.bf16.mxu1 %v5967_v7  ;;  %v649_v7 = vld [vmem:[#allocation7 + $0x8] sm:$0xf] }
 0x258   :  { %4211 = vmatpush1.bf16.msra.mxu0 %v5962_v8  ;;  %4340 = vmatpush1.bf16.msra.mxu1 %v5965_v10  ;;  %v687_v8 = vrot.slane %v649_v7, %v654_v1  ;;  %v695_v10 = vrot.slane %v649_v7, %v662_v2 }
 0x259   :  { %4212 = vmatprep.subr.bf16.mxu0 %v5970_v11  ;;  %4341 = vmatprep.subr.bf16.mxu1 %v5973_v12  ;;  %v691_v11 = vrot.slane %v649_v7, %v658_v5  ;;  %v699_v12 = vrot.slane %v649_v7, %v666_v6 }
 0x25c   :  { %4213 = vmatpush1.bf16.msra.mxu0 %v5968_v13  ;;  %4342 = vmatpush1.bf16.msra.mxu1 %v5971_v14 }
 0x25d   :  { %4214 = vmatprep.subr.bf16.mxu0 %v5976_v15  ;;  %4343 = vmatprep.subr.bf16.mxu1 %v5979_v16 }
 0x260   :  { %4215 = vmatpush1.bf16.msra.mxu0 %v5974_v18  ;;  %4344 = vmatpush1.bf16.msra.mxu1 %v5977_v19 }
 0x261   :  { %4216 = vmatprep.subr.bf16.mxu0 %v5982_v20  ;;  %4345 = vmatprep.subr.bf16.mxu1 %v5985_v21 }
 0x264   :  { %4217 = vmatpush1.bf16.msra.mxu0 %v5980_v22  ;;  %4346 = vmatpush1.bf16.msra.mxu1 %v5983_v23 }
 0x265   :  { %4218 = vmatprep.subr.bf16.mxu0 %v5988_v24  ;;  %4347 = vmatprep.subr.bf16.mxu1 %v5991_v27 }
 0x268   :  { %4219 = vmatpush1.bf16.msra.mxu0 %v5986_v28  ;;  %4348 = vmatpush1.bf16.msra.mxu1 %v5989_v29 }
 0x269   :  { %4220 = vmatprep.subr.bf16.mxu0 %v5994_v30  ;;  %4349 = vmatprep.subr.bf16.mxu1 %v5997_v31 }
 0x26c   :  { %4221 = vmatpush1.bf16.msra.mxu0 %v5992_v32  ;;  %4350 = vmatpush1.bf16.msra.mxu1 %v5995_v33 }
 0x26d   :  { %4222 = vmatprep.subr.bf16.mxu0 %v6000_v34  ;;  %4351 = vmatprep.subr.bf16.mxu1 %v6003_v35 }
 0x270   :  { %4223 = vmatpush1.bf16.msra.mxu0 %v5998_v37  ;;  %4352 = vmatpush1.bf16.msra.mxu1 %v6001_v38 }
 0x271   :  { %4224 = vmatprep.subr.bf16.mxu0 %v6006_v39  ;;  %4353 = vmatprep.subr.bf16.mxu1 %v6009_v9 }
 0x274   :  { %4225 = vmatpush1.bf16.msra.mxu0 %v6004_v40  ;;  %4354 = vmatpush1.bf16.msra.mxu1 %v6007_v41 }
 0x277   :  { %4227 = vmatmul.mubr.bf16.vlgmr.msra.gmra.mrb[8].mxu0 %v6199_v26  ;;  %4356 = vmatmul.mubr.bf16.vlgmr.msra.gmra.mrb[8].mxu1 %v6199_v26 }
 0x28a   :  { %v3970_v48 = vpop.f32.mrb[4].mxu0  ;;  %v4099_v49 = vpop.f32.mrb[4].mxu1 }
 0x28b   :  { %v5076_v51 = vadd.f32 %v3970_v48, %v671_v45  ;;  %v5080_v26 = vadd.f32 %v4099_v49, %v679_v46  ;;  %v3972_v52 = vpop.f32.mrb[5].mxu0  ;;  %v4101_v25 = vpop.f32.mrb[5].mxu1 }
 0x28c   :  { %v5077_v53 = vadd.f32 %v3972_v52, %v675_v17  ;;  %v5081_v54 = vadd.f32 %v4101_v25, %v683_v47  ;;  %v3974_v55 = vpop.f32.mrb[6].mxu0  ;;  %v4103_v56 = vpop.f32.mrb[6].mxu1 }
 0x28d   :  { %v5078_v57 = vadd.f32 %v3974_v55, %v671_v45  ;;  %v5082_v58 = vadd.f32 %v4103_v56, %v679_v46  ;;  %v3976_v59 = vpop.f32.mrb[7].mxu0  ;;  %v4105_v61 = vpop.f32.mrb[7].mxu1 }
 0x28e   :  { %v5058_v62 = vpack.c.bf16 %v5077_v53, %v5076_v51  ;;  %v5059_v63 = vpack.c.bf16 %v5081_v54, %v5080_v26  ;;  %v5079_v0 = vadd.f32 %v3976_v59, %v675_v17  ;;  %v5083_v50 = vadd.f32 %v4105_v61, %v683_v47 }
 0x290   :  { %4440 = vst [vmem:[#allocation8 + $0x10] sm:$0xff] %v5058_v62  ;;  %4441 = vst [vmem:[#allocation8 + $0x18] sm:$0xff] %v5059_v63  ;;  %v5064_v4 = vpack.c.bf16 %v5079_v0, %v5078_v57  ;;  %v5065_v3 = vpack.c.bf16 %v5083_v50, %v5082_v58 }
 0x292   :  { %4446 = vst [vmem:[#allocation8 + $0x40] sm:$0xff] %v5064_v4  ;;  %4447 = vst [vmem:[#allocation8 + $0x48] sm:$0xff] %v5065_v3 }
 0x34a   :  { %v4228_v13 = vpop.f32.mrb[8].mxu0  ;;  %v4357_v14 = vpop.f32.mrb[8].mxu1 }
 0x34b   :  { %v5084_v15 = vadd.f32 %v4228_v13, %v687_v8  ;;  %v5088_v16 = vadd.f32 %v4357_v14, %v695_v10  ;;  %v4230_v18 = vpop.f32.mrb[9].mxu0  ;;  %v4359_v19 = vpop.f32.mrb[9].mxu1 }
 0x34c   :  { %v5085_v20 = vadd.f32 %v4230_v18, %v691_v11  ;;  %v5089_v21 = vadd.f32 %v4359_v19, %v699_v12  ;;  %v4232_v22 = vpop.f32.mrb[10].mxu0  ;;  %v4361_v23 = vpop.f32.mrb[10].mxu1 }
 0x34d   :  { %v5086_v1 = vadd.f32 %v4232_v22, %v687_v8  ;;  %v5090_v24 = vadd.f32 %v4361_v23, %v695_v10  ;;  %v4234_v27 = vpop.f32.mrb[11].mxu0  ;;  %v4363_v2 = vpop.f32.mrb[11].mxu1 }
 0x34e   :  { %v5060_v5 = vpack.c.bf16 %v5085_v20, %v5084_v15  ;;  %v5061_v28 = vpack.c.bf16 %v5089_v21, %v5088_v16  ;;  %v5087_v60 = vadd.f32 %v4234_v27, %v691_v11  ;;  %v5091_v6 = vadd.f32 %v4363_v2, %v699_v12 }
 0x350   :  { %4442 = vst [vmem:[#allocation8 + $0x20] sm:$0xff] %v5060_v5  ;;  %4443 = vst [vmem:[#allocation8 + $0x28] sm:$0xff] %v5061_v28  ;;  %v5066_v29 = vpack.c.bf16 %v5087_v60, %v5086_v1  ;;  %v5067_v30 = vpack.c.bf16 %v5091_v6, %v5090_v24 }
 0x352   :  { %4448 = vst [vmem:[#allocation8 + $0x50] sm:$0xff] %v5066_v29  ;;  %4449 = vst [vmem:[#allocation8 + $0x58] sm:$0xff] %v5067_v30 }
 0x353   :  { %6087 = shalt.err (!%p6084_p0)
}
 0x354   :  { %s6088_s27 = scalar_lea.hbm %s6281_s3, 1536 }
 0x355   :  { %p6089_p1 = scmp.ne.s32.totalorder %s6281_s3, %s6088_s27  ;;  %p6092_p2 = scmp.lt.u32.totalorder %s6088_s27, %s6281_s3 }
 0x357   :  { %p6094_p3 = pnand %p6092_p2, %p6089_p1 }
 0x359   :  { %6097 = shalt.err (!%p6094_p3)
}
 0x35a   :  { %4461 = dma.vmem_to_hbm [thread:$0]  %s4456_s21, 1536, %s6281_s3, [#allocation4], %s6106_s24, %s6106_s24, %s6107_s25  }
 0x35b   :  { %6102 = dma.done.wait [#allocation4], 1536  }
 0x35c   :  { %6103 = vsyncadd [#allocation4], 4294965760 }
 0x35d   :  { %4465 = vsyncpa [#allocation3], 1 }
 0x35e   :  { %4466 = vsyncpa [#allocation6], 1 }
 0x35f   :  { %4467 = vsyncpa [#allocation4], 1 }

</bundles_post_ra>
